<compile_context>
chip_gen: v7x
topology: tpu7x:2x2x1
jax: 0.10.0
libtpu: 0.0.40
codegen_flags: <defaults>
</compile_context>

<pallas_src>
import functools

import numpy as np
import jax
import jax.numpy as jnp
from jax.experimental import pallas as pl
from jax.experimental.pallas import tpu as pltpu

# Small synthetic stand-in for load_config()['audio']
CONFIG = dict(
    sample_rate=16000,
    chunk_len=1,          # seconds (kept small; real config uses 30)
    hop_len=160,
    n_fft_large=512,
    n_fft_med=256,        # unused in the output path
    n_fft_small=128,
    n_mels_large=64,
    n_mels_med=32,        # unused in the output path
    n_mels_small=32,
)


def _ceil_to(x, m):
    return ((x + m - 1) // m) * m


# ---------------------------------------------------------------------------
# Parameter construction (numpy, built once; matches torchaudio defaults)
# ---------------------------------------------------------------------------
def _hann_np(n_fft):
    n = np.arange(n_fft, dtype=np.float64)
    return 0.5 * (1.0 - np.cos(2.0 * np.pi * n / n_fft))     # periodic Hann


def _rdft_weight_np(n_fft, n_freqs):
    """Fused windowed rDFT weight (2*n_freqs, n_fft): [win*cos; -win*sin].

    x = W @ frames_T gives x[:n_freqs] = Re(STFT), x[n_freqs:] = -Im(STFT)
    (sign irrelevant, it gets squared).  n_freqs = n_fft // 2 — Nyquist bin
    dropped (its mel-filterbank weight is exactly 0 for this config).
    """
    n = np.arange(n_fft, dtype=np.float64)[None, :]
    k = np.arange(n_freqs, dtype=np.float64)[:, None]
    ang = 2.0 * np.pi * n * k / n_fft
    w = _hann_np(n_fft)[None, :]
    return np.concatenate([w * np.cos(ang), -(w * np.sin(ang))], axis=0)


def _melscale_fbanks_np(n_freqs, f_min, f_max, n_mels, sample_rate):
    """torchaudio.functional.melscale_fbanks (mel_scale='htk', norm=None)."""
    def hz_to_mel(f):
        return 2595.0 * np.log10(1.0 + f / 700.0)

    def mel_to_hz(m):
        return 700.0 * (10.0 ** (m / 2595.0) - 1.0)

    all_freqs = np.linspace(0.0, sample_rate // 2, n_freqs)
    m_pts = np.linspace(hz_to_mel(f_min), hz_to_mel(f_max), n_mels + 2)
    f_pts = mel_to_hz(m_pts)
    f_diff = f_pts[1:] - f_pts[:-1]                       # (n_mels + 1,)
    slopes = f_pts[None, :] - all_freqs[:, None]          # (n_freqs, n_mels+2)
    down = (-1.0 * slopes[:, :-2]) / f_diff[:-1]
    up = slopes[:, 2:] / f_diff[1:]
    return np.maximum(0.0, np.minimum(down, up))          # (n_freqs, n_mels)


@functools.lru_cache(maxsize=1)
def _build_kernel_weights():
    """Built once (host-side numpy), returned as bf16 constants."""
    cfg = CONFIG
    sr = cfg["sample_rate"]
    nfL, nfS = cfg["n_fft_large"], cfg["n_fft_small"]
    nmelL, nmelS = cfg["n_mels_large"], cfg["n_mels_small"]
    nfreqL, nfreqS = nfL // 2, nfS // 2

    WL = _rdft_weight_np(nfL, nfreqL)                     # (512, 512)
    WS = _rdft_weight_np(nfS, nfreqS)                     # (128, 128)
    fbL_full = _melscale_fbanks_np(nfL // 2 + 1, 30.0, 8000.0, nmelL, sr)
    fbS_full = _melscale_fbanks_np(nfS // 2 + 1, 30.0, 4000.0, nmelS, sr)

    # Nyquist-drop validity: checked at build time on numpy values (never in
    # a traced path, so jax.jit on the forward cannot hit a concretization
    # error).  Holds because f_max == sr/2 (large) and f_max <= sr/4 (small).
    assert np.max(np.abs(fbL_full[-1])) < 1e-3
    assert np.max(np.abs(fbS_full[-1])) < 1e-3

    bf16 = jnp.bfloat16
    return (np.ascontiguousarray(WL).astype(bf16),
            np.ascontiguousarray(fbL_full[:-1].T).astype(bf16),   # (64, 256)
            np.ascontiguousarray(WS).astype(bf16),
            np.ascontiguousarray(fbS_full[:-1].T).astype(bf16))   # (32, 64)


def frame_wav_T(wav, n_fft, hop, num_frames, num_frames_padded):
    """Center-padded (reflect) STFT framing, transposed to (B, n_fft, T_pad)."""
    pad = n_fft // 2
    padded = jnp.pad(wav, ((0, 0), (pad, pad)), mode="reflect")
    idx = jnp.arange(n_fft)[:, None] + jnp.arange(num_frames)[None, :] * hop
    frames = padded[:, idx].astype(jnp.float32)           # (B, n_fft, T)
    if num_frames_padded > num_frames:
        frames = jnp.pad(
            frames, ((0, 0), (0, 0), (0, num_frames_padded - num_frames)))
    return frames


# ---------------------------------------------------------------------------
# Pallas kernel: fused windowed rDFT -> power spectrum -> mel -> log10
# (bf16 MXU inputs, f32 accumulation; time dim in lanes; max-normalization
#  done in a cheap XLA epilogue)
# ---------------------------------------------------------------------------
def log_mel_kernel(fr_ref, wl_ref, fbl_ref, ws_ref, fbs_ref, out_ref,
                   *, nfreq_l, nfreq_s, nmel_l, fft_off, n_fft_s):
    frames = fr_ref[0]                                    # (n_fft_large, tile_T) bf16

    # Large bank: one [cos;-sin] bf16 matmul (f32 acc) -> power -> mel.
    xl = jnp.dot(wl_ref[...], frames, preferred_element_type=jnp.float32)
    power_l = xl[:nfreq_l] * xl[:nfreq_l] + xl[nfreq_l:] * xl[nfreq_l:]
    mel_l = jnp.dot(fbl_ref[...], power_l.astype(jnp.bfloat16),
                    preferred_element_type=jnp.float32)
    out_ref[0, :nmel_l] = jnp.log10(jnp.maximum(mel_l, 1e-10))

    # Small bank re-uses the centre n_fft_small rows of the large frame
    # (16-aligned static slice -> no extra HBM input / DMA stream).
    frames_s = frames[fft_off:fft_off + n_fft_s]
    xs = jnp.dot(ws_ref[...], frames_s, preferred_element_type=jnp.float32)
    power_s = xs[:nfreq_s] * xs[:nfreq_s] + xs[nfreq_s:] * xs[nfreq_s:]
    mel_s = jnp.dot(fbs_ref[...], power_s.astype(jnp.bfloat16),
                    preferred_element_type=jnp.float32)
    out_ref[0, nmel_l:] = jnp.log10(jnp.maximum(mel_s, 1e-10))


def audio_transform_forward(wav):
    """Deterministic AudioTransform.forward (shift=0, no random augs triggered)."""
    cfg = CONFIG
    hop = cfg["hop_len"]
    nfL, nfS = cfg["n_fft_large"], cfg["n_fft_small"]
    nmelL, nmelS = cfg["n_mels_large"], cfg["n_mels_small"]
    nfreqL, nfreqS = nfL // 2, nfS // 2                   # Nyquist bin dropped
    nmel_total = nmelL + nmelS

    B, num_samples = wav.shape
    T = num_samples // hop        # matches torch.stft(center=True)[..., :-1]

    # Time tiling: lane-dense multiple of 128, up to 1024 (>=3 steps/TC on
    # v7x at chunk_len=30, low padding waste, per-step overhead amortized).
    tile_T = min(1024, _ceil_to(T, 128))
    T_pad = _ceil_to(T, tile_T)
    num_t_tiles = T_pad // tile_T

    framesT = frame_wav_T(wav, nfL, hop, T, T_pad).astype(jnp.bfloat16)

    WL, fbLT, WS, fbST = _build_kernel_weights()          # bf16 constants

    kernel = functools.partial(
        log_mel_kernel,
        nfreq_l=nfreqL, nfreq_s=nfreqS, nmel_l=nmelL,
        fft_off=(nfL - nfS) // 2, n_fft_s=nfS)

    log_mel = pl.pallas_call(
        kernel,
        out_shape=jax.ShapeDtypeStruct((B, nmel_total, T_pad), jnp.float32),
        grid_spec=pltpu.PrefetchScalarGridSpec(
            num_scalar_prefetch=0,
            grid=(B, num_t_tiles),
            in_specs=[
                pl.BlockSpec((1, nfL, tile_T), lambda b, t: (b, 0, t)),
                pl.BlockSpec((2 * nfreqL, nfL), lambda b, t: (0, 0)),
                pl.BlockSpec((nmelL, nfreqL), lambda b, t: (0, 0)),
                pl.BlockSpec((2 * nfreqS, nfS), lambda b, t: (0, 0)),
                pl.BlockSpec((nmelS, nfreqS), lambda b, t: (0, 0)),
            ],
            out_specs=pl.BlockSpec((1, nmel_total, tile_T),
                                   lambda b, t: (b, 0, t)),
        ),
        compiler_params=pltpu.CompilerParams(
            dimension_semantics=("parallel", "parallel"),
            # Covers v5e's 16 MiB scoped default at tile_T=1024 (footprint
            # ~10 MiB in bf16); no-op / harmless on v6e & v7x.
            vmem_limit_bytes=32 * 1024 * 1024),
    )(framesT, WL, fbLT, WS, fbST)

    # Epilogue (cheap, elementwise): drop time padding, per-example global max
    # over (mel, time), clamp at max-8, affine rescale -> matches norm_mel.
    log_mel = log_mel[:, :, :T]
    gmax = jnp.max(log_mel, axis=(1, 2), keepdims=True)
    log_mel = jnp.maximum(log_mel, gmax - 8.0)
    return (log_mel + 4.0) / 4.0                          # (B, n_mels_total, T)


# ---------------------------------------------------------------------------
# Pure-JAX f32 reference (independent: keeps Nyquist bin, frames each bank
# itself, highest-precision matmuls)
# ---------------------------------------------------------------------------
def reference_forward(wav):
    cfg = CONFIG
    sr, hop = cfg["sample_rate"], cfg["hop_len"]
    B, num_samples = wav.shape
    T = num_samples // hop

    def bank(n_fft, n_mels, f_max):
        pad = n_fft // 2
        padded = jnp.pad(wav, ((0, 0), (pad, pad)), mode="reflect")
        idx = jnp.arange(T)[:, None] * hop + jnp.arange(n_fft)[None, :]
        frames = padded[:, idx].astype(jnp.float32)       # (B, T, n_fft)
        win = _hann_np(n_fft)
        n = np.arange(n_fft, dtype=np.float64)[:, None]
        k = np.arange(n_fft // 2 + 1, dtype=np.float64)[None, :]
        ang = 2.0 * np.pi * n * k / n_fft
        C = jnp.asarray((win[:, None] * np.cos(ang)).astype(np.float32))
        S = jnp.asarray((win[:, None] * -np.sin(ang)).astype(np.float32))
        re = jnp.einsum("btn,nf->btf", frames, C, precision="highest")
        im = jnp.einsum("btn,nf->btf", frames, S, precision="highest")
        power = re * re + im * im
        fb = jnp.asarray(
            _melscale_fbanks_np(n_fft // 2 + 1, 30.0, f_max, n_mels, sr)
            .astype(np.float32))
        return jnp.einsum("btf,fm->btm", power, fb, precision="highest")

    mel = jnp.concatenate(
        [bank(cfg["n_fft_large"], cfg["n_mels_large"], 8000.0),
         bank(cfg["n_fft_small"], cfg["n_mels_small"], 4000.0)], axis=-1)
    log = jnp.log10(jnp.maximum(mel, 1e-10))
    gmax = jnp.max(log, axis=(1, 2), keepdims=True)
    log = jnp.maximum(log, gmax - 8.0)
    return jnp.transpose((log + 4.0) / 4.0, (0, 2, 1))    # (B, n_mels_total, T)


if __name__ == "__main__":
    key = jax.random.PRNGKey(0)
    num_samples = CONFIG["sample_rate"] * CONFIG["chunk_len"]
    wav = 0.1 * jax.random.normal(key, (2, num_samples), dtype=jnp.float32)

    fwd = jax.jit(audio_transform_forward)     # jit-safe (no traced asserts)
    out = jax.block_until_ready(fwd(wav))

    n_mels_total = CONFIG["n_mels_large"] + CONFIG["n_mels_small"]
    T = num_samples // CONFIG["hop_len"]
    assert out.shape == (2, n_mels_total, T), out.shape
    assert out.dtype == jnp.float32

    ref = reference_forward(wav)
    err_max = float(jnp.max(jnp.abs(out - ref)))
    err_mean = float(jnp.mean(jnp.abs(out - ref)))
    # bf16 MXU inputs (f32 accumulation): tight on average; the looser max
    # bound covers sporadic near-zero spectrum bins that dominate a single
    # low-frequency mel filter, where relative bf16 error is largest.
    assert err_mean < 5e-3, f"mean abs err too large: {err_mean}"
    assert err_max < 1e-1, f"max abs err too large: {err_max}"

    print("KERNEL_OK")
</pallas_src>

<mosaic_0001>
module attributes {stable_mosaic.version = 11 : i64} {
  func.func @log_mel_kernel(%arg0: i32, %arg1: i32, %arg2: memref<1x512x128xbf16, #tpu.memory_space<vmem>>, %arg3: memref<512x512xbf16, #tpu.memory_space<vmem>>, %arg4: memref<64x256xbf16, #tpu.memory_space<vmem>>, %arg5: memref<128x128xbf16, #tpu.memory_space<vmem>>, %arg6: memref<32x64xbf16, #tpu.memory_space<vmem>>, %arg7: memref<1x96x128xf32, #tpu.memory_space<vmem>>) attributes {dimension_semantics = [#tpu.dimension_semantics<parallel>, #tpu.dimension_semantics<parallel>], iteration_bounds = array<i64: 2, 1>, scalar_prefetch = 0 : i64, scratch_operands = 0 : i64, tpu.core_type = #tpu.core_type<tc>, window_params = [{transform_indices = @transform_0, window_bounds = array<i64: 1, 512, 128>}, {pipeline_mode = #tpu.pipeline_mode<synchronous>, transform_indices = @transform_1, window_bounds = array<i64: 512, 512>}, {pipeline_mode = #tpu.pipeline_mode<synchronous>, transform_indices = @transform_2, window_bounds = array<i64: 64, 256>}, {pipeline_mode = #tpu.pipeline_mode<synchronous>, transform_indices = @transform_3, window_bounds = array<i64: 128, 128>}, {pipeline_mode = #tpu.pipeline_mode<synchronous>, transform_indices = @transform_4, window_bounds = array<i64: 32, 64>}, {transform_indices = @transform_5, window_bounds = array<i64: 1, 96, 128>}]} {
    %c0 = arith.constant 0 : index
    %c0_0 = arith.constant 0 : index
    %c0_1 = arith.constant 0 : index
    %0 = vector.load %arg2[%c0, %c0_0, %c0_1] : memref<1x512x128xbf16, #tpu.memory_space<vmem>>, vector<1x512x128xbf16>
    %1 = vector.shape_cast %0 : vector<1x512x128xbf16> to vector<512x128xbf16>
    %c0_2 = arith.constant 0 : index
    %c0_3 = arith.constant 0 : index
    %2 = vector.load %arg3[%c0_2, %c0_3] : memref<512x512xbf16, #tpu.memory_space<vmem>>, vector<512x512xbf16>
    %cst = arith.constant dense<0.000000e+00> : vector<512x128xf32>
    %3 = tpu.matmul %2, %1, %cst {dimension_numbers = #tpu.dot_dimension_numbers<[1], [0], [0], [1], [0, 0, 1, 1], [], []>} : vector<512x512xbf16>, vector<512x128xbf16>, vector<512x128xf32> -> vector<512x128xf32>
    %4 = vector.extract_strided_slice %3 {offsets = [0, 0], sizes = [256, 128], strides = [1, 1]} : vector<512x128xf32> to vector<256x128xf32>
    %5 = vector.extract_strided_slice %3 {offsets = [0, 0], sizes = [256, 128], strides = [1, 1]} : vector<512x128xf32> to vector<256x128xf32>
    %6 = arith.mulf %4, %5 : vector<256x128xf32>
    %7 = vector.extract_strided_slice %3 {offsets = [256, 0], sizes = [256, 128], strides = [1, 1]} : vector<512x128xf32> to vector<256x128xf32>
    %8 = vector.extract_strided_slice %3 {offsets = [256, 0], sizes = [256, 128], strides = [1, 1]} : vector<512x128xf32> to vector<256x128xf32>
    %9 = arith.mulf %7, %8 : vector<256x128xf32>
    %10 = arith.addf %6, %9 : vector<256x128xf32>
    %c0_4 = arith.constant 0 : index
    %c0_5 = arith.constant 0 : index
    %11 = vector.load %arg4[%c0_4, %c0_5] : memref<64x256xbf16, #tpu.memory_space<vmem>>, vector<64x256xbf16>
    %12 = arith.truncf %10 : vector<256x128xf32> to vector<256x128xbf16>
    %cst_6 = arith.constant dense<0.000000e+00> : vector<64x128xf32>
    %13 = tpu.matmul %11, %12, %cst_6 {dimension_numbers = #tpu.dot_dimension_numbers<[1], [0], [0], [1], [0, 0, 1, 1], [], []>} : vector<64x256xbf16>, vector<256x128xbf16>, vector<64x128xf32> -> vector<64x128xf32>
    %cst_7 = arith.constant 1.000000e-10 : f32
    %14 = vector.broadcast %cst_7 : f32 to vector<64x128xf32>
    %15 = arith.maximumf %13, %14 : vector<64x128xf32>
    %16 = math.log %15 : vector<64x128xf32>
    %cst_8 = arith.constant 0.434294492 : f32
    %17 = vector.broadcast %cst_8 : f32 to vector<64x128xf32>
    %18 = arith.mulf %16, %17 : vector<64x128xf32>
    %c0_9 = arith.constant 0 : index
    %c0_10 = arith.constant 0 : index
    %c0_11 = arith.constant 0 : index
    %19 = vector.load %arg7[%c0_9, %c0_10, %c0_11] : memref<1x96x128xf32, #tpu.memory_space<vmem>>, vector<1x64x128xf32>
    %20 = vector.shape_cast %19 : vector<1x64x128xf32> to vector<64x128xf32>
    %21 = vector.shape_cast %18 : vector<64x128xf32> to vector<1x64x128xf32>
    tpu.vector_store %arg7[%c0_9, %c0_10, %c0_11], %21 {strides = array<i32>} : memref<1x96x128xf32, #tpu.memory_space<vmem>>, vector<1x64x128xf32>,
    %22 = vector.extract_strided_slice %1 {offsets = [192, 0], sizes = [128, 128], strides = [1, 1]} : vector<512x128xbf16> to vector<128x128xbf16>
    %c0_12 = arith.constant 0 : index
    %c0_13 = arith.constant 0 : index
    %23 = vector.load %arg5[%c0_12, %c0_13] : memref<128x128xbf16, #tpu.memory_space<vmem>>, vector<128x128xbf16>
    %cst_14 = arith.constant dense<0.000000e+00> : vector<128x128xf32>
    %24 = tpu.matmul %23, %22, %cst_14 {dimension_numbers = #tpu.dot_dimension_numbers<[1], [0], [0], [1], [0, 0, 1, 1], [], []>} : vector<128x128xbf16>, vector<128x128xbf16>, vector<128x128xf32> -> vector<128x128xf32>
    %25 = vector.extract_strided_slice %24 {offsets = [0, 0], sizes = [64, 128], strides = [1, 1]} : vector<128x128xf32> to vector<64x128xf32>
    %26 = vector.extract_strided_slice %24 {offsets = [0, 0], sizes = [64, 128], strides = [1, 1]} : vector<128x128xf32> to vector<64x128xf32>
    %27 = arith.mulf %25, %26 : vector<64x128xf32>
    %28 = vector.extract_strided_slice %24 {offsets = [64, 0], sizes = [64, 128], strides = [1, 1]} : vector<128x128xf32> to vector<64x128xf32>
    %29 = vector.extract_strided_slice %24 {offsets = [64, 0], sizes = [64, 128], strides = [1, 1]} : vector<128x128xf32> to vector<64x128xf32>
    %30 = arith.mulf %28, %29 : vector<64x128xf32>
    %31 = arith.addf %27, %30 : vector<64x128xf32>
    %c0_15 = arith.constant 0 : index
    %c0_16 = arith.constant 0 : index
    %32 = vector.load %arg6[%c0_15, %c0_16] : memref<32x64xbf16, #tpu.memory_space<vmem>>, vector<32x64xbf16>
    %33 = arith.truncf %31 : vector<64x128xf32> to vector<64x128xbf16>
    %cst_17 = arith.constant dense<0.000000e+00> : vector<32x128xf32>
    %34 = tpu.matmul %32, %33, %cst_17 {dimension_numbers = #tpu.dot_dimension_numbers<[1], [0], [0], [1], [0, 0, 1, 1], [], []>} : vector<32x64xbf16>, vector<64x128xbf16>, vector<32x128xf32> -> vector<32x128xf32>
    %cst_18 = arith.constant 1.000000e-10 : f32
    %35 = vector.broadcast %cst_18 : f32 to vector<32x128xf32>
    %36 = arith.maximumf %34, %35 : vector<32x128xf32>
    %37 = math.log %36 : vector<32x128xf32>
    %cst_19 = arith.constant 0.434294492 : f32
    %38 = vector.broadcast %cst_19 : f32 to vector<32x128xf32>
    %39 = arith.mulf %37, %38 : vector<32x128xf32>
    %c0_20 = arith.constant 0 : index
    %c64 = arith.constant 64 : index
    %c0_21 = arith.constant 0 : index
    %40 = vector.load %arg7[%c0_20, %c64, %c0_21] : memref<1x96x128xf32, #tpu.memory_space<vmem>>, vector<1x32x128xf32>
    %41 = vector.shape_cast %40 : vector<1x32x128xf32> to vector<32x128xf32>
    %42 = vector.shape_cast %39 : vector<32x128xf32> to vector<1x32x128xf32>
    tpu.vector_store %arg7[%c0_20, %c64, %c0_21], %42 {strides = array<i32>} : memref<1x96x128xf32, #tpu.memory_space<vmem>>, vector<1x32x128xf32>,
    return
  }
  func.func @transform_0(%arg0: i32, %arg1: i32) -> (i32, i32, i32) {
    %c0_i32 = arith.constant 0 : i32
    %c0_i32_0 = arith.constant 0 : i32
    return %arg0, %c0_i32, %arg1 : i32, i32, i32
  }
  func.func @transform_1(%arg0: i32, %arg1: i32) -> (i32, i32) {
    %c0_i32 = arith.constant 0 : i32
    %c0_i32_0 = arith.constant 0 : i32
    %c0_i32_1 = arith.constant 0 : i32
    return %c0_i32, %c0_i32_0 : i32, i32
  }
  func.func @transform_2(%arg0: i32, %arg1: i32) -> (i32, i32) {
    %c0_i32 = arith.constant 0 : i32
    %c0_i32_0 = arith.constant 0 : i32
    %c0_i32_1 = arith.constant 0 : i32
    return %c0_i32, %c0_i32_0 : i32, i32
  }
  func.func @transform_3(%arg0: i32, %arg1: i32) -> (i32, i32) {
    %c0_i32 = arith.constant 0 : i32
    %c0_i32_0 = arith.constant 0 : i32
    %c0_i32_1 = arith.constant 0 : i32
    return %c0_i32, %c0_i32_0 : i32, i32
  }
  func.func @transform_4(%arg0: i32, %arg1: i32) -> (i32, i32) {
    %c0_i32 = arith.constant 0 : i32
    %c0_i32_0 = arith.constant 0 : i32
    %c0_i32_1 = arith.constant 0 : i32
    return %c0_i32, %c0_i32_0 : i32, i32
  }
  func.func @transform_5(%arg0: i32, %arg1: i32) -> (i32, i32, i32) {
    %c0_i32 = arith.constant 0 : i32
    %c0_i32_0 = arith.constant 0 : i32
    return %arg0, %c0_i32, %arg1 : i32, i32, i32
  }
}

</mosaic_0001>

<bundles_post_ra>
// kernel: audio_transform_forward.1
= control target key start
LH: loop header
LB: loop body
LE: loop exit
PB: predicated region body
PF: predicated region fallthrough
CT: control target
= control target key end

     0   :  { %s3248_s18 = smov 0   ;;  %s3250_s19 = smov 0   ;;  %s4120_s0 = inlined_call_operand.vmem [shape: bf16[2,512,128], index: 0, kind: input, shape index: {}]   ;;  %s4121_s1 = inlined_call_operand.vmem [shape: bf16[512,512], index: 1, kind: input, shape index: {}]   ;;  %s4122_s2 = inlined_call_operand.vmem [shape: bf16[64,256], index: 2, kind: input, shape index: {}]   ;;  %s4123_s3 = inlined_call_operand.vmem [shape: bf16[128,128], index: 3, kind: input, shape index: {}]   ;;  %s4124_s4 = inlined_call_operand.vmem [shape: bf16[32,64], index: 4, kind: input, shape index: {}]   ;;  %s4125_s5 = inlined_call_operand.vmem [shape: f32[2,96,128], index: 5, kind: output, shape index: {}]  }
   0x1   :  { %s3252_s20 = smov 0  }
   0x2 LB: > { %s27_s21 = sadd.s32 1, %s3211_s19  ;;  %p2490_p0 = scmp.ge.s32.totalorder %s3215_s20, 1  ;;  %s3215_s20 = sphi %s3252_s20, %s15_s20   ;;  %s3211_s19 = sphi %s3250_s19, %s4127_s19   ;;  %s3207_s18 = sphi %s3248_s18, %s4126_s18  }
   0x3   : > { %p29_p1 = scmp.ge.s32.totalorder %s27_s21, 2  ;;  %p206_p2 = scmp.lt.s32.totalorder %s3215_s20, 3 }
   0x5   : > { %s4129_s21 = smov (%p29_p1, %s27_s21), 0  ;;  %p207_p3 = pnand %p2490_p0, %p206_p2 }
   0x6   : > { %p240_p4 = scmp.lt.s32.totalorder (!%p207_p3), %s3207_s18, 1  ;;  %v3217_v0 = vmov (!%p207_p3), 0   ;;  %v2939_v1 = vld [vmem:[%s4121_s1 + $0x4] ss:$16 sps:$4 sm:$0xff] (!%p207_p3)   ;;  %v2966_v19 = vld [vmem:[%s4121_s1 + $0xac] ss:$16 sps:$4 sm:$0xff] (!%p207_p3)  }
   0x7   : > { %210 = sbr.rel (%p207_p3) target bundleno = 1122 (0x462), region = 40  ;;  %1281 = vmatprep.subr.bf16.mxu0 (!%p207_p3), %v3217_v0  ;;  %2783 = vmatprep.subr.bf16.mxu1 (!%p207_p3), %v3217_v0  ;;  %v2937_v32 = vld [vmem:[%s4121_s1] ss:$16 sps:$4 sm:$0xff] (!%p207_p3)   ;;  %v2942_v34 = vld [vmem:[%s4121_s1 + $0x24] ss:$16 sps:$4 sm:$0xff] (!%p207_p3)   ;;  %vm2327_vm0 = vcmask (!%p207_p3), 523264  }
   0x8   : > { %1313 = vmatprep.mubr.bf16.mxu0 (!%p207_p3), %v2939_v1  ;;  %1642 = vmatprep.mubr.bf16.mxu1 (!%p207_p3), %v2966_v19  ;;  %v2944_v36 = vld [vmem:[%s4121_s1 + $0x20] ss:$16 sps:$4 sm:$0xff] (!%p207_p3)   ;;  %v2947_v38 = vld [vmem:[%s4121_s1 + $0x44] ss:$16 sps:$4 sm:$0xff] (!%p207_p3)   ;;  %v2964_v39 = vld [vmem:[%s4121_s1 + $0xa8] ss:$16 sps:$4 sm:$0xff] (!%p207_p3)  }
   0x9   : > { %v2970_v40 = vld [vmem:[%s4121_s1 + $0xcc] ss:$16 sps:$4 sm:$0xff] (!%p207_p3)   ;;  %v2949_v41 = vld [vmem:[%s4121_s1 + $0x40] ss:$16 sps:$4 sm:$0xff] (!%p207_p3)   ;;  %v2952_v42 = vld [vmem:[%s4121_s1 + $0x64] ss:$16 sps:$4 sm:$0xff] (!%p207_p3)  }
   0xa   : > { %v2973_v43 = vld [vmem:[%s4121_s1 + $0xc8] ss:$16 sps:$4 sm:$0xff] (!%p207_p3)   ;;  %v2976_v44 = vld [vmem:[%s4121_s1 + $0xec] ss:$16 sps:$4 sm:$0xff] (!%p207_p3)   ;;  %v2954_v45 = vld [vmem:[%s4121_s1 + $0x60] ss:$16 sps:$4 sm:$0xff] (!%p207_p3)  }
   0xb   : > { %v2957_v46 = vld [vmem:[%s4121_s1 + $0x84] ss:$16 sps:$4 sm:$0xff] (!%p207_p3)   ;;  %v2979_v47 = vld [vmem:[%s4121_s1 + $0xe8] ss:$16 sps:$4 sm:$0xff] (!%p207_p3)   ;;  %v2982_v48 = vld [vmem:[%s4121_s1 + $0x10c] ss:$16 sps:$4 sm:$0xff] (!%p207_p3)  }
   0xc   : > { %v2959_v49 = vld [vmem:[%s4121_s1 + $0x80] ss:$16 sps:$4 sm:$0xff] (!%p207_p3)   ;;  %v2962_v50 = vld [vmem:[%s4121_s1 + $0xa4] ss:$16 sps:$4 sm:$0xff] (!%p207_p3)   ;;  %v2985_v51 = vld [vmem:[%s4121_s1 + $0x108] ss:$16 sps:$4 sm:$0xff] (!%p207_p3)  }
   0xd   : > { %v2988_v52 = vld [vmem:[%s4121_s1 + $0x12c] ss:$16 sps:$4 sm:$0xff] (!%p207_p3)   ;;  %v2967_v53 = vld [vmem:[%s4121_s1 + $0xa0] ss:$16 sps:$4 sm:$0xff] (!%p207_p3)   ;;  %v2968_v54 = vld [vmem:[%s4121_s1 + $0xc4] ss:$16 sps:$4 sm:$0xff] (!%p207_p3)  }
   0xe   : > { %s4131_s18 = smov (!%p240_p4, %s3207_s18), 1  ;;  %v2991_v55 = vld [vmem:[%s4121_s1 + $0x128] ss:$16 sps:$4 sm:$0xff]   ;;  %v2994_v56 = vld [vmem:[%s4121_s1 + $0x14c] ss:$16 sps:$4 sm:$0xff]  }
   0xf   : > { %s2676_s24 = sshll.u32 %s4131_s18, 8  ;;  %v2972_v57 = vld [vmem:[%s4121_s1 + $0xc0] ss:$16 sps:$4 sm:$0xff]   ;;  %v2974_v58 = vld [vmem:[%s4121_s1 + $0xe4] ss:$16 sps:$4 sm:$0xff]   ;;  %s2889_s10 = smul.u32 96, %s4131_s18 }
  0x10   : > { %s3277_s27 = scalar_lea.vmem %s4120_s0, %s2676_s24  ;;  %v2997_v59 = vld [vmem:[%s4121_s1 + $0x148] ss:$16 sps:$4 sm:$0xff]   ;;  %v3000_v60 = vld [vmem:[%s4121_s1 + $0x16c] ss:$16 sps:$4 sm:$0xff]   ;;  %v2978_v61 = vld [vmem:[%s4121_s1 + $0xe0] ss:$16 sps:$4 sm:$0xff]  }
  0x11   : > { %v2915_v2 = vld [vmem:[%s3277_s27] sm:$0xff]   ;;  %v2916_v3 = vld [vmem:[%s3277_s27 + $0x8] sm:$0xff]   ;;  %v2917_v4 = vld [vmem:[%s3277_s27 + $0x10] sm:$0xff]   ;;  %s4093_s13 = scalar_lea.vmem %s4125_s5, %s2889_s10 }
  0x12   : > { %1282 = vmatpush1.bf16.msra.mxu0 %v2915_v2  ;;  %v2918_v5 = vld [vmem:[%s3277_s27 + $0x18] sm:$0xff]   ;;  %v3287_v6 = vld [vmem:[%s3277_s27 + $0x80] sm:$0xff]   ;;  %v3291_v7 = vld [vmem:[%s3277_s27 + $0x88] sm:$0xff]  }
  0x13   : > { %1283 = vmatprep.subr.bf16.mxu0 %v3217_v0  ;;  %2799 = vmatpush1.bf16.msra.mxu1 %v3287_v6  ;;  %v2919_v8 = vld [vmem:[%s3277_s27 + $0x20] sm:$0xff]   ;;  %v3298_v9 = vld [vmem:[%s3277_s27 + $0x90] sm:$0xff]   ;;  %v2920_v10 = vld [vmem:[%s3277_s27 + $0x28] sm:$0xff]  }
  0x14   : > { %2784 = vmatprep.subr.bf16.mxu1 %v3217_v0  ;;  %v3305_v11 = vld [vmem:[%s3277_s27 + $0x98] sm:$0xff]   ;;  %v2921_v12 = vld [vmem:[%s3277_s27 + $0x30] sm:$0xff]   ;;  %v3312_v13 = vld [vmem:[%s3277_s27 + $0xa0] sm:$0xff]  }
  0x15   : > { %v2922_v14 = vld [vmem:[%s3277_s27 + $0x38] sm:$0xff]   ;;  %v3319_v15 = vld [vmem:[%s3277_s27 + $0xa8] sm:$0xff]   ;;  %v2923_v16 = vld [vmem:[%s3277_s27 + $0x40] sm:$0xff]  }
  0x16   : > { %1284 = vmatpush1.bf16.msra.mxu0 %v2916_v3  ;;  %v3326_v17 = vld [vmem:[%s3277_s27 + $0xb0] sm:$0xff]   ;;  %v2924_v18 = vld [vmem:[%s3277_s27 + $0x48] sm:$0xff]   ;;  %v3336_v20 = vld [vmem:[%s3277_s27 + $0xb8] sm:$0xff]  }
  0x17   : > { %1285 = vmatprep.subr.bf16.mxu0 %v3217_v0  ;;  %2800 = vmatpush1.bf16.msra.mxu1 %v3291_v7  ;;  %v2925_v21 = vld [vmem:[%s3277_s27 + $0x50] sm:$0xff]   ;;  %v3343_v22 = vld [vmem:[%s3277_s27 + $0xc0] sm:$0xff]   ;;  %v2927_v23 = vld [vmem:[%s3277_s27 + $0x58] sm:$0xff]  }
  0x18   : > { %2785 = vmatprep.subr.bf16.mxu1 %v3217_v0  ;;  %v3350_v24 = vld [vmem:[%s3277_s27 + $0xc8] sm:$0xff]   ;;  %v2929_v25 = vld [vmem:[%s3277_s27 + $0x60] sm:$0xff]   ;;  %v3357_v26 = vld [vmem:[%s3277_s27 + $0xd0] sm:$0xff]  }
  0x19   : > { %v2931_v27 = vld [vmem:[%s3277_s27 + $0x68] sm:$0xff]   ;;  %v3364_v28 = vld [vmem:[%s3277_s27 + $0xd8] sm:$0xff]   ;;  %v2933_v29 = vld [vmem:[%s3277_s27 + $0x70] sm:$0xff]  }
  0x1a   : > { %1286 = vmatpush1.bf16.msra.mxu0 %v2917_v4  ;;  %v3371_v30 = vld [vmem:[%s3277_s27 + $0xe0] sm:$0xff]   ;;  %v2935_v31 = vld [vmem:[%s3277_s27 + $0x78] sm:$0xff]   ;;  %v3381_v33 = vld [vmem:[%s3277_s27 + $0xe8] sm:$0xff]  }
  0x1b   : > { %1287 = vmatprep.subr.bf16.mxu0 %v3217_v0  ;;  %2801 = vmatpush1.bf16.msra.mxu1 %v3298_v9  ;;  %v3390_v35 = vld [vmem:[%s3277_s27 + $0xf0] sm:$0xff]   ;;  %v3397_v37 = vld [vmem:[%s3277_s27 + $0xf8] sm:$0xff]  }
  0x1c   : > { %2786 = vmatprep.subr.bf16.mxu1 %v3217_v0  ;;  %v2980_v62 = vld [vmem:[%s4121_s1 + $0x104] ss:$16 sps:$4 sm:$0xff]   ;;  %v3003_v63 = vld [vmem:[%s4121_s1 + $0x168] ss:$16 sps:$4 sm:$0xff]   ;;  %v3006_v1 = vld [vmem:[%s4121_s1 + $0x18c] ss:$16 sps:$4 sm:$0xff]  }
  0x1d   : > { %v2984_v2 = vld [vmem:[%s4121_s1 + $0x100] ss:$16 sps:$4 sm:$0xff]   ;;  %v2986_v3 = vld [vmem:[%s4121_s1 + $0x124] ss:$16 sps:$4 sm:$0xff]   ;;  %v3009_v4 = vld [vmem:[%s4121_s1 + $0x188] ss:$16 sps:$4 sm:$0xff]  }
  0x1e   : > { %1288 = vmatpush1.bf16.msra.mxu0 %v2918_v5  ;;  %v2990_v5 = vld [vmem:[%s4121_s1 + $0x120] ss:$16 sps:$4 sm:$0xff]   ;;  %v3033_v19 = vld [vmem:[%s4121_s1 + $0x208] ss:$16 sps:$4 sm:$0xff]  }
  0x1f   : > { %1289 = vmatprep.subr.bf16.mxu0 %v3217_v0  ;;  %2802 = vmatpush1.bf16.msra.mxu1 %v3305_v11 }
  0x20   : > { %2787 = vmatprep.subr.bf16.mxu1 %v3217_v0 }
  0x22   : > { %1290 = vmatpush1.bf16.msra.mxu0 %v2919_v8  ;;  %v3018_v8 = vld [vmem:[%s4121_s1 + $0x1cc] ss:$16 sps:$4 sm:$0xff]  }
  0x23   : > { %1291 = vmatprep.subr.bf16.mxu0 %v3217_v0  ;;  %2803 = vmatpush1.bf16.msra.mxu1 %v3312_v13 }
  0x24   : > { %2788 = vmatprep.subr.bf16.mxu1 %v3217_v0 }
  0x26   : > { %1292 = vmatpush1.bf16.msra.mxu0 %v2920_v10  ;;  %v2998_v10 = vld [vmem:[%s4121_s1 + $0x164] ss:$16 sps:$4 sm:$0xff]  }
  0x27   : > { %1293 = vmatprep.subr.bf16.mxu0 %v3217_v0  ;;  %2804 = vmatpush1.bf16.msra.mxu1 %v3319_v15 }
  0x28   : > { %2789 = vmatprep.subr.bf16.mxu1 %v3217_v0 }
  0x2a   : > { %1294 = vmatpush1.bf16.msra.mxu0 %v2921_v12  ;;  %v3024_v12 = vld [vmem:[%s4121_s1 + $0x1ec] ss:$16 sps:$4 sm:$0xff]  }
  0x2b   : > { %1295 = vmatprep.subr.bf16.mxu0 %v3217_v0  ;;  %2805 = vmatpush1.bf16.msra.mxu1 %v3326_v17 }
  0x2c   : > { %2790 = vmatprep.subr.bf16.mxu1 %v3217_v0 }
  0x2e   : > { %1296 = vmatpush1.bf16.msra.mxu0 %v2922_v14  ;;  %v3004_v14 = vld [vmem:[%s4121_s1 + $0x184] ss:$16 sps:$4 sm:$0xff]  }
  0x2f   : > { %1297 = vmatprep.subr.bf16.mxu0 %v3217_v0  ;;  %2806 = vmatpush1.bf16.msra.mxu1 %v3336_v20 }
  0x30   : > { %2791 = vmatprep.subr.bf16.mxu1 %v3217_v0 }
  0x32   : > { %1298 = vmatpush1.bf16.msra.mxu0 %v2923_v16  ;;  %v3030_v16 = vld [vmem:[%s4121_s1 + $0x20c] ss:$16 sps:$4 sm:$0xff]  }
  0x33   : > { %1299 = vmatprep.subr.bf16.mxu0 %v3217_v0  ;;  %2807 = vmatpush1.bf16.msra.mxu1 %v3343_v22 }
  0x34   : > { %2792 = vmatprep.subr.bf16.mxu1 %v3217_v0 }
  0x36   : > { %1300 = vmatpush1.bf16.msra.mxu0 %v2924_v18  ;;  %v3010_v18 = vld [vmem:[%s4121_s1 + $0x1a4] ss:$16 sps:$4 sm:$0xff]  }
  0x37   : > { %1301 = vmatprep.subr.bf16.mxu0 %v3217_v0  ;;  %2808 = vmatpush1.bf16.msra.mxu1 %v3350_v24 }
  0x38   : > { %2793 = vmatprep.subr.bf16.mxu1 %v3217_v0 }
  0x3a   : > { %1302 = vmatpush1.bf16.msra.mxu0 %v2925_v21  ;;  %v3014_v21 = vld [vmem:[%s4121_s1 + $0x1a0] ss:$16 sps:$4 sm:$0xff]  }
  0x3b   : > { %1303 = vmatprep.subr.bf16.mxu0 %v3217_v0  ;;  %2809 = vmatpush1.bf16.msra.mxu1 %v3357_v26 }
  0x3c   : > { %2794 = vmatprep.subr.bf16.mxu1 %v3217_v0 }
  0x3e   : > { %1304 = vmatpush1.bf16.msra.mxu0 %v2927_v23  ;;  %v3039_v23 = vld [vmem:[%s4121_s1 + $0x228] ss:$16 sps:$4 sm:$0xff]  }
  0x3f   : > { %1305 = vmatprep.subr.bf16.mxu0 %v3217_v0  ;;  %2810 = vmatpush1.bf16.msra.mxu1 %v3364_v28 }
  0x40   : > { %2795 = vmatprep.subr.bf16.mxu1 %v3217_v0 }
  0x42   : > { %1306 = vmatpush1.bf16.msra.mxu0 %v2929_v25  ;;  %v3020_v25 = vld [vmem:[%s4121_s1 + $0x1c0] ss:$16 sps:$4 sm:$0xff]  }
  0x43   : > { %1307 = vmatprep.subr.bf16.mxu0 %v3217_v0  ;;  %2811 = vmatpush1.bf16.msra.mxu1 %v3371_v30 }
  0x44   : > { %2796 = vmatprep.subr.bf16.mxu1 %v3217_v0 }
  0x46   : > { %1308 = vmatpush1.bf16.msra.mxu0 %v2931_v27  ;;  %v3045_v27 = vld [vmem:[%s4121_s1 + $0x248] ss:$16 sps:$4 sm:$0xff]  }
  0x47   : > { %1309 = vmatprep.subr.bf16.mxu0 %v3217_v0  ;;  %2812 = vmatpush1.bf16.msra.mxu1 %v3381_v33 }
  0x48   : > { %2797 = vmatprep.subr.bf16.mxu1 %v3217_v0 }
  0x4a   : > { %1310 = vmatpush1.bf16.msra.mxu0 %v2933_v29  ;;  %v3026_v29 = vld [vmem:[%s4121_s1 + $0x1e0] ss:$16 sps:$4 sm:$0xff]  }
  0x4b   : > { %1311 = vmatprep.subr.bf16.mxu0 %v3217_v0  ;;  %2813 = vmatpush1.bf16.msra.mxu1 %v3390_v35 }
  0x4c   : > { %2798 = vmatprep.subr.bf16.mxu1 %v3217_v0 }
  0x4e   : > { %1312 = vmatpush1.bf16.msra.mxu0 %v2935_v31  ;;  %v3051_v31 = vld [vmem:[%s4121_s1 + $0x268] ss:$16 sps:$4 sm:$0xff]  }
  0x4f   : > { %1570 = vmatprep.subr.bf16.mxu0 %v3217_v0  ;;  %2814 = vmatpush1.bf16.msra.mxu1 %v3397_v37 }
  0x51   : > { %1314 = vmatmul.mubr.bf16.vlgmr.msra.gmra.mrb[0].mxu0 %v2937_v32  ;;  %v3054_v32 = vld [vmem:[%s4121_s1 + $0x28c] ss:$16 sps:$4 sm:$0xff]  }
  0x52   : > { %1321 = vmatprep.mubr.bf16.mxu0 %v2942_v34  ;;  %1571 = vmatpush1.bf16.msra.mxu0 %v3287_v6  ;;  %v2992_v6 = vld [vmem:[%s4121_s1 + $0x144] ss:$16 sps:$4 sm:$0xff]  }
  0x53   : > { %1572 = vmatprep.subr.bf16.mxu0 %v3217_v0  ;;  %1643 = vmatmul.mubr.bf16.vlgmr.msra.gmra.mrb[0].mxu1 %v2964_v39  ;;  %v3034_v34 = vld [vmem:[%s4121_s1 + $0x224] ss:$16 sps:$4 sm:$0xff]   ;;  %v3063_v39 = vld [vmem:[%s4121_s1 + $0x2a8] ss:$16 sps:$4 sm:$0xff]  }
  0x54   : > { %1650 = vmatprep.mubr.bf16.mxu1 %v2970_v40  ;;  %v3066_v40 = vld [vmem:[%s4121_s1 + $0x2cc] ss:$16 sps:$4 sm:$0xff]  }
  0x56   : > { %1573 = vmatpush1.bf16.msra.mxu0 %v3291_v7  ;;  %v3015_v7 = vld [vmem:[%s4121_s1 + $0x1a8] ss:$16 sps:$4 sm:$0xff]  }
  0x57   : > { %1574 = vmatprep.subr.bf16.mxu0 %v3217_v0 }
  0x59   : > { %1322 = vmatmul.mubr.bf16.gmra.mrb[4].mxu0 %v2944_v36  ;;  %v3060_v36 = vld [vmem:[%s4121_s1 + $0x2ac] ss:$16 sps:$4 sm:$0xff]  }
  0x5a   : > { %1329 = vmatprep.mubr.bf16.mxu0 %v2947_v38  ;;  %1575 = vmatpush1.bf16.msra.mxu0 %v3298_v9  ;;  %v2996_v9 = vld [vmem:[%s4121_s1 + $0x140] ss:$16 sps:$4 sm:$0xff]   ;;  %v3040_v38 = vld [vmem:[%s4121_s1 + $0x244] ss:$16 sps:$4 sm:$0xff]  }
  0x5b   : > { %1576 = vmatprep.subr.bf16.mxu0 %v3217_v0  ;;  %1651 = vmatmul.mubr.bf16.gmra.mrb[4].mxu1 %v2973_v43  ;;  %v3069_v43 = vld [vmem:[%s4121_s1 + $0x2c8] ss:$16 sps:$4 sm:$0xff]  }
  0x5c   : > { %1658 = vmatprep.mubr.bf16.mxu1 %v2976_v44  ;;  %v3072_v44 = vld [vmem:[%s4121_s1 + $0x2ec] ss:$16 sps:$4 sm:$0xff]  }
  0x5e   : > { %1577 = vmatpush1.bf16.msra.mxu0 %v3305_v11  ;;  %v3021_v11 = vld [vmem:[%s4121_s1 + $0x1c8] ss:$16 sps:$4 sm:$0xff]  }
  0x5f   : > { %1578 = vmatprep.subr.bf16.mxu0 %v3217_v0 }
  0x61   : > { %1330 = vmatmul.mubr.bf16.gmra.mrb[8].mxu0 %v2949_v41  ;;  %v3044_v41 = vld [vmem:[%s4121_s1 + $0x240] ss:$16 sps:$4 sm:$0xff]  }
  0x62   : > { %1337 = vmatprep.mubr.bf16.mxu0 %v2952_v42  ;;  %1579 = vmatpush1.bf16.msra.mxu0 %v3312_v13  ;;  %v3002_v13 = vld [vmem:[%s4121_s1 + $0x160] ss:$16 sps:$4 sm:$0xff]   ;;  %v3046_v42 = vld [vmem:[%s4121_s1 + $0x264] ss:$16 sps:$4 sm:$0xff]  }
  0x63   : > { %1580 = vmatprep.subr.bf16.mxu0 %v3217_v0  ;;  %1659 = vmatmul.mubr.bf16.gmra.mrb[8].mxu1 %v2979_v47  ;;  %v3075_v47 = vld [vmem:[%s4121_s1 + $0x2e8] ss:$16 sps:$4 sm:$0xff]  }
  0x64   : > { %1666 = vmatprep.mubr.bf16.mxu1 %v2982_v48  ;;  %v3078_v48 = vld [vmem:[%s4121_s1 + $0x30c] ss:$16 sps:$4 sm:$0xff]  }
  0x66   : > { %1581 = vmatpush1.bf16.msra.mxu0 %v3319_v15  ;;  %v3027_v15 = vld [vmem:[%s4121_s1 + $0x1e8] ss:$16 sps:$4 sm:$0xff]  }
  0x67   : > { %1582 = vmatprep.subr.bf16.mxu0 %v3217_v0 }
  0x69   : > { %1338 = vmatmul.mubr.bf16.gmra.mrb[12].mxu0 %v2954_v45  ;;  %v3050_v45 = vld [vmem:[%s4121_s1 + $0x260] ss:$16 sps:$4 sm:$0xff]  }
  0x6a   : > { %1345 = vmatprep.mubr.bf16.mxu0 %v2957_v46  ;;  %1583 = vmatpush1.bf16.msra.mxu0 %v3326_v17  ;;  %v3008_v17 = vld [vmem:[%s4121_s1 + $0x180] ss:$16 sps:$4 sm:$0xff]   ;;  %v3052_v46 = vld [vmem:[%s4121_s1 + $0x284] ss:$16 sps:$4 sm:$0xff]  }
  0x6b   : > { %1584 = vmatprep.subr.bf16.mxu0 %v3217_v0  ;;  %1667 = vmatmul.mubr.bf16.gmra.mrb[12].mxu1 %v2985_v51  ;;  %v3081_v51 = vld [vmem:[%s4121_s1 + $0x308] ss:$16 sps:$4 sm:$0xff]  }
  0x6c   : > { %1674 = vmatprep.mubr.bf16.mxu1 %v2988_v52  ;;  %v3084_v52 = vld [vmem:[%s4121_s1 + $0x32c] ss:$16 sps:$4 sm:$0xff]  }
  0x6e   : > { %1585 = vmatpush1.bf16.msra.mxu0 %v3336_v20  ;;  %v3036_v20 = vld [vmem:[%s4121_s1 + $0x22c] ss:$16 sps:$4 sm:$0xff]  }
  0x6f   : > { %1586 = vmatprep.subr.bf16.mxu0 %v3217_v0 }
  0x71   : > { %1346 = vmatmul.mubr.bf16.gmra.mrb[16].mxu0 %v2959_v49  ;;  %v3056_v49 = vld [vmem:[%s4121_s1 + $0x280] ss:$16 sps:$4 sm:$0xff]  }
  0x72   : > { %1353 = vmatprep.mubr.bf16.mxu0 %v2962_v50  ;;  %1587 = vmatpush1.bf16.msra.mxu0 %v3343_v22  ;;  %v3016_v22 = vld [vmem:[%s4121_s1 + $0x1c4] ss:$16 sps:$4 sm:$0xff]  }
  0x73   : > { %1588 = vmatprep.subr.bf16.mxu0 %v3217_v0  ;;  %1675 = vmatmul.mubr.bf16.gmra.mrb[16].mxu1 %v2991_v55  ;;  %v3058_v50 = vld [vmem:[%s4121_s1 + $0x2a4] ss:$16 sps:$4 sm:$0xff]   ;;  %v3087_v55 = vld [vmem:[%s4121_s1 + $0x328] ss:$16 sps:$4 sm:$0xff]  }
  0x74   : > { %1682 = vmatprep.mubr.bf16.mxu1 %v2994_v56  ;;  %v3090_v56 = vld [vmem:[%s4121_s1 + $0x34c] ss:$16 sps:$4 sm:$0xff]  }
  0x76   : > { %1589 = vmatpush1.bf16.msra.mxu0 %v3350_v24  ;;  %v3042_v24 = vld [vmem:[%s4121_s1 + $0x24c] ss:$16 sps:$4 sm:$0xff]  }
  0x77   : > { %1590 = vmatprep.subr.bf16.mxu0 %v3217_v0 }
  0x79   : > { %1354 = vmatmul.mubr.bf16.gmra.mrb[20].mxu0 %v2967_v53  ;;  %v3062_v53 = vld [vmem:[%s4121_s1 + $0x2a0] ss:$16 sps:$4 sm:$0xff]  }
  0x7a   : > { %1361 = vmatprep.mubr.bf16.mxu0 %v2968_v54  ;;  %1591 = vmatpush1.bf16.msra.mxu0 %v3357_v26  ;;  %v3022_v26 = vld [vmem:[%s4121_s1 + $0x1e4] ss:$16 sps:$4 sm:$0xff]  }
  0x7b   : > { %1592 = vmatprep.subr.bf16.mxu0 %v3217_v0  ;;  %1683 = vmatmul.mubr.bf16.gmra.mrb[20].mxu1 %v2997_v59  ;;  %v3064_v54 = vld [vmem:[%s4121_s1 + $0x2c4] ss:$16 sps:$4 sm:$0xff]   ;;  %v3093_v59 = vld [vmem:[%s4121_s1 + $0x348] ss:$16 sps:$4 sm:$0xff]  }
  0x7c   : > { %1690 = vmatprep.mubr.bf16.mxu1 %v3000_v60  ;;  %v3096_v60 = vld [vmem:[%s4121_s1 + $0x36c] ss:$16 sps:$4 sm:$0xff]  }
  0x7e   : > { %1593 = vmatpush1.bf16.msra.mxu0 %v3364_v28  ;;  %v3048_v28 = vld [vmem:[%s4121_s1 + $0x26c] ss:$16 sps:$4 sm:$0xff]  }
  0x7f   : > { %1594 = vmatprep.subr.bf16.mxu0 %v3217_v0 }
  0x81   : > { %1362 = vmatmul.mubr.bf16.gmra.mrb[24].mxu0 %v2972_v57  ;;  %v3068_v57 = vld [vmem:[%s4121_s1 + $0x2c0] ss:$16 sps:$4 sm:$0xff]  }
  0x82   : > { %1369 = vmatprep.mubr.bf16.mxu0 %v2974_v58  ;;  %1595 = vmatpush1.bf16.msra.mxu0 %v3371_v30  ;;  %v3028_v30 = vld [vmem:[%s4121_s1 + $0x204] ss:$16 sps:$4 sm:$0xff]  }
  0x83   : > { %1596 = vmatprep.subr.bf16.mxu0 %v3217_v0  ;;  %1691 = vmatmul.mubr.bf16.gmra.mrb[24].mxu1 %v3003_v63  ;;  %v3070_v58 = vld [vmem:[%s4121_s1 + $0x2e4] ss:$16 sps:$4 sm:$0xff]   ;;  %v3099_v63 = vld [vmem:[%s4121_s1 + $0x368] ss:$16 sps:$4 sm:$0xff]  }
  0x84   : > { %1698 = vmatprep.mubr.bf16.mxu1 %v3006_v1  ;;  %v3102_v1 = vld [vmem:[%s4121_s1 + $0x38c] ss:$16 sps:$4 sm:$0xff]  }
  0x86   : > { %1597 = vmatpush1.bf16.msra.mxu0 %v3381_v33  ;;  %v3032_v33 = vld [vmem:[%s4121_s1 + $0x200] ss:$16 sps:$4 sm:$0xff]  }
  0x87   : > { %1598 = vmatprep.subr.bf16.mxu0 %v3217_v0 }
  0x89   : > { %1370 = vmatmul.mubr.bf16.gmra.mrb[28].mxu0 %v2978_v61  ;;  %v3074_v61 = vld [vmem:[%s4121_s1 + $0x2e0] ss:$16 sps:$4 sm:$0xff]  }
  0x8a   : > { %1377 = vmatprep.mubr.bf16.mxu0 %v2980_v62  ;;  %1599 = vmatpush1.bf16.msra.mxu0 %v3390_v35  ;;  %v3057_v35 = vld [vmem:[%s4121_s1 + $0x288] ss:$16 sps:$4 sm:$0xff]   ;;  %v3076_v62 = vld [vmem:[%s4121_s1 + $0x304] ss:$16 sps:$4 sm:$0xff]  }
  0x8b   : > { %1600 = vmatprep.subr.bf16.mxu0 %v3217_v0  ;;  %v3012_v0 = vld [vmem:[%s4121_s1 + $0x1ac] ss:$16 sps:$4 sm:$0xff]   ;;  %1699 = vmatmul.mubr.bf16.gmra.mrb[28].mxu1 %v3009_v4  ;;  %v3105_v4 = vld [vmem:[%s4121_s1 + $0x388] ss:$16 sps:$4 sm:$0xff]  }
  0x8c   : > { %1706 = vmatprep.mubr.bf16.mxu1 %v3012_v0  ;;  %v3108_v0 = vld [vmem:[%s4121_s1 + $0x3ac] ss:$16 sps:$4 sm:$0xff]  }
  0x8e   : > { %1601 = vmatpush1.bf16.msra.mxu0 %v3397_v37  ;;  %v3038_v37 = vld [vmem:[%s4121_s1 + $0x220] ss:$16 sps:$4 sm:$0xff]  }
  0x91   : > { %1378 = vmatmul.mubr.bf16.gmra.mrb[32].mxu0 %v2984_v2  ;;  %v3080_v2 = vld [vmem:[%s4121_s1 + $0x300] ss:$16 sps:$4 sm:$0xff]  }
  0x92   : > { %1385 = vmatprep.mubr.bf16.mxu0 %v2986_v3  ;;  %v3082_v3 = vld [vmem:[%s4121_s1 + $0x324] ss:$16 sps:$4 sm:$0xff]  }
  0x93   : > { %1707 = vmatmul.mubr.bf16.gmra.mrb[32].mxu1 %v3015_v7  ;;  %v3111_v7 = vld [vmem:[%s4121_s1 + $0x3a8] ss:$16 sps:$4 sm:$0xff]  }
  0x94   : > { %1714 = vmatprep.mubr.bf16.mxu1 %v3018_v8  ;;  %v3114_v8 = vld [vmem:[%s4121_s1 + $0x3cc] ss:$16 sps:$4 sm:$0xff]  }
  0x99   : > { %1386 = vmatmul.mubr.bf16.gmra.mrb[36].mxu0 %v2990_v5  ;;  %v3086_v5 = vld [vmem:[%s4121_s1 + $0x320] ss:$16 sps:$4 sm:$0xff]  }
  0x9a   : > { %1393 = vmatprep.mubr.bf16.mxu0 %v2992_v6  ;;  %v3088_v6 = vld [vmem:[%s4121_s1 + $0x344] ss:$16 sps:$4 sm:$0xff]  }
  0x9b   : > { %1715 = vmatmul.mubr.bf16.gmra.mrb[36].mxu1 %v3021_v11  ;;  %v3117_v11 = vld [vmem:[%s4121_s1 + $0x3c8] ss:$16 sps:$4 sm:$0xff]  }
  0x9c   : > { %1722 = vmatprep.mubr.bf16.mxu1 %v3024_v12  ;;  %v3120_v12 = vld [vmem:[%s4121_s1 + $0x3ec] ss:$16 sps:$4 sm:$0xff]  }
  0xa1   : > { %1394 = vmatmul.mubr.bf16.gmra.mrb[40].mxu0 %v2996_v9  ;;  %v3092_v9 = vld [vmem:[%s4121_s1 + $0x340] ss:$16 sps:$4 sm:$0xff]  }
  0xa2   : > { %1401 = vmatprep.mubr.bf16.mxu0 %v2998_v10  ;;  %v3094_v10 = vld [vmem:[%s4121_s1 + $0x364] ss:$16 sps:$4 sm:$0xff]  }
  0xa3   : > { %1723 = vmatmul.mubr.bf16.gmra.mrb[40].mxu1 %v3027_v15  ;;  %v3123_v15 = vld [vmem:[%s4121_s1 + $0x3e8] ss:$16 sps:$4 sm:$0xff]  }
  0xa4   : > { %1730 = vmatprep.mubr.bf16.mxu1 %v3030_v16  ;;  %v3104_v16 = vld [vmem:[%s4121_s1 + $0x380] ss:$16 sps:$4 sm:$0xff]  }
  0xa9   : > { %1402 = vmatmul.mubr.bf16.gmra.mrb[44].mxu0 %v3002_v13  ;;  %v3098_v13 = vld [vmem:[%s4121_s1 + $0x360] ss:$16 sps:$4 sm:$0xff]  }
  0xaa   : > { %1409 = vmatprep.mubr.bf16.mxu0 %v3004_v14  ;;  %v3100_v14 = vld [vmem:[%s4121_s1 + $0x384] ss:$16 sps:$4 sm:$0xff]  }
  0xab   : > { %1731 = vmatmul.mubr.bf16.gmra.mrb[44].mxu1 %v3033_v19 }
  0xac   : > { %1738 = vmatprep.mubr.bf16.mxu1 %v3036_v20 }
  0xb1   : > { %1410 = vmatmul.mubr.bf16.gmra.mrb[48].mxu0 %v3008_v17  ;;  %v3106_v17 = vld [vmem:[%s4121_s1 + $0x3a4] ss:$16 sps:$4 sm:$0xff]  }
  0xb2   : > { %1417 = vmatprep.mubr.bf16.mxu0 %v3010_v18 }
  0xb3   : > { %1739 = vmatmul.mubr.bf16.gmra.mrb[48].mxu1 %v3039_v23  ;;  %v3112_v23 = vld [vmem:[%s4121_s1 + $0x3c4] ss:$16 sps:$4 sm:$0xff]  }
  0xb4   : > { %1746 = vmatprep.mubr.bf16.mxu1 %v3042_v24 }
  0xb9   : > { %1418 = vmatmul.mubr.bf16.gmra.mrb[52].mxu0 %v3014_v21 }
  0xba   : > { %1425 = vmatprep.mubr.bf16.mxu0 %v3016_v22  ;;  %v3110_v22 = vld [vmem:[%s4121_s1 + $0x3a0] ss:$16 sps:$4 sm:$0xff]  }
  0xbb   : > { %1747 = vmatmul.mubr.bf16.gmra.mrb[52].mxu1 %v3045_v27 }
  0xbc   : > { %1754 = vmatprep.mubr.bf16.mxu1 %v3048_v28  ;;  %v3116_v28 = vld [vmem:[%s4121_s1 + $0x3c0] ss:$16 sps:$4 sm:$0xff]  }
  0xc1   : > { %1426 = vmatmul.mubr.bf16.gmra.mrb[56].mxu0 %v3020_v25 }
  0xc2   : > { %1433 = vmatprep.mubr.bf16.mxu0 %v3022_v26 }
  0xc3   : > { %1755 = vmatmul.mubr.bf16.gmra.mrb[56].mxu1 %v3051_v31 }
  0xc4   : > { %1762 = vmatprep.mubr.bf16.mxu1 %v3054_v32 }
  0xc9   : > { %1434 = vmatmul.mubr.bf16.gmra.mrb[60].mxu0 %v3026_v29  ;;  %v3118_v29 = vld [vmem:[%s4121_s1 + $0x3e4] ss:$16 sps:$4 sm:$0xff]  }
  0xca   : > { %1441 = vmatprep.mubr.bf16.mxu0 %v3028_v30 }
  0xcb   : > { %1763 = vmatmul.mubr.bf16.gmra.mrb[60].mxu1 %v3057_v35  ;;  %v3126_v35 = vld [vmem:[%s4121_s1 + $0xc] ss:$16 sps:$4 sm:$0xff]  }
  0xcc   : > { %1770 = vmatprep.mubr.bf16.mxu1 %v3060_v36 }
  0xd1   : > { %1442 = vmatmul.mubr.bf16.gmra.mrb[64].mxu0 %v3032_v33 }
  0xd2   : > { %1449 = vmatprep.mubr.bf16.mxu0 %v3034_v34  ;;  %v3122_v34 = vld [vmem:[%s4121_s1 + $0x3e0] ss:$16 sps:$4 sm:$0xff]  }
  0xd3   : > { %1771 = vmatmul.mubr.bf16.gmra.mrb[64].mxu1 %v3063_v39 }
  0xd4   : > { %1778 = vmatprep.mubr.bf16.mxu1 %v3066_v40 }
  0xd9   : > { %1450 = vmatmul.mubr.bf16.gmra.mrb[68].mxu0 %v3038_v37 }
  0xda   : > { %1457 = vmatprep.mubr.bf16.mxu0 %v3040_v38 }
  0xdb   : > { %1779 = vmatmul.mubr.bf16.gmra.mrb[68].mxu1 %v3069_v43  ;;  %v3124_v43 = vld [vmem:[%s4121_s1 + $0x8] ss:$16 sps:$4 sm:$0xff]  }
  0xdc   : > { %1786 = vmatprep.mubr.bf16.mxu1 %v3072_v44 }
  0xe1   : > { %1458 = vmatmul.mubr.bf16.gmra.mrb[72].mxu0 %v3044_v41 }
  0xe2   : > { %1465 = vmatprep.mubr.bf16.mxu0 %v3046_v42 }
  0xe3   : > { %1787 = vmatmul.mubr.bf16.gmra.mrb[72].mxu1 %v3075_v47 }
  0xe4   : > { %1794 = vmatprep.mubr.bf16.mxu1 %v3078_v48 }
  0xe9   : > { %1466 = vmatmul.mubr.bf16.gmra.mrb[76].mxu0 %v3050_v45  ;;  %v3127_v45 = vld [vmem:[%s4121_s1 + $0x2c] ss:$16 sps:$4 sm:$0xff]  }
  0xea   : > { %1473 = vmatprep.mubr.bf16.mxu0 %v3052_v46 }
  0xeb   : > { %1795 = vmatmul.mubr.bf16.gmra.mrb[76].mxu1 %v3081_v51 }
  0xec   : > { %1802 = vmatprep.mubr.bf16.mxu1 %v3084_v52 }
  0xf1   : > { %1474 = vmatmul.mubr.bf16.gmra.mrb[80].mxu0 %v3056_v49 }
  0xf2   : > { %1481 = vmatprep.mubr.bf16.mxu0 %v3058_v50 }
  0xf3   : > { %1803 = vmatmul.mubr.bf16.gmra.mrb[80].mxu1 %v3087_v55  ;;  %v3129_v55 = vld [vmem:[%s4121_s1 + $0x28] ss:$16 sps:$4 sm:$0xff]  }
  0xf4   : > { %1810 = vmatprep.mubr.bf16.mxu1 %v3090_v56 }
  0xf9   : > { %1482 = vmatmul.mubr.bf16.gmra.mrb[84].mxu0 %v3062_v53 }
  0xfa   : > { %1489 = vmatprep.mubr.bf16.mxu0 %v3064_v54 }
  0xfb   : > { %1811 = vmatmul.mubr.bf16.gmra.mrb[84].mxu1 %v3093_v59 }
  0xfc   : > { %1818 = vmatprep.mubr.bf16.mxu1 %v3096_v60 }
 0x101   : > { %1490 = vmatmul.mubr.bf16.gmra.mrb[88].mxu0 %v3068_v57  ;;  %v3130_v57 = vld [vmem:[%s4121_s1 + $0x4c] ss:$16 sps:$4 sm:$0xff]  }
 0x102   : > { %1497 = vmatprep.mubr.bf16.mxu0 %v3070_v58 }
 0x103   : > { %1819 = vmatmul.mubr.bf16.gmra.mrb[88].mxu1 %v3099_v63 }
 0x104   : > { %1826 = vmatprep.mubr.bf16.mxu1 %v3102_v1 }
 0x109   : > { %1498 = vmatmul.mubr.bf16.gmra.mrb[92].mxu0 %v3074_v61 }
 0x10a   : > { %1505 = vmatprep.mubr.bf16.mxu0 %v3076_v62 }
 0x10b   : > { %1827 = vmatmul.mubr.bf16.gmra.mrb[92].mxu1 %v3105_v4  ;;  %v3132_v4 = vld [vmem:[%s4121_s1 + $0x48] ss:$16 sps:$4 sm:$0xff]  }
 0x10c   : > { %1834 = vmatprep.mubr.bf16.mxu1 %v3108_v0 }
 0x111   : > { %1506 = vmatmul.mubr.bf16.gmra.mrb[96].mxu0 %v3080_v2 }
 0x112   : > { %1513 = vmatprep.mubr.bf16.mxu0 %v3082_v3 }
 0x113   : > { %1835 = vmatmul.mubr.bf16.gmra.mrb[96].mxu1 %v3111_v7 }
 0x114   : > { %1842 = vmatprep.mubr.bf16.mxu1 %v3114_v8 }
 0x119   : > { %1514 = vmatmul.mubr.bf16.gmra.mrb[100].mxu0 %v3086_v5  ;;  %v3133_v5 = vld [vmem:[%s4121_s1 + $0x6c] ss:$16 sps:$4 sm:$0xff]  }
 0x11a   : > { %1521 = vmatprep.mubr.bf16.mxu0 %v3088_v6 }
 0x11b   : > { %1843 = vmatmul.mubr.bf16.gmra.mrb[100].mxu1 %v3117_v11 }
 0x11c   : > { %1850 = vmatprep.mubr.bf16.mxu1 %v3120_v12 }
 0x121   : > { %1522 = vmatmul.mubr.bf16.gmra.mrb[104].mxu0 %v3092_v9 }
 0x122   : > { %1529 = vmatprep.mubr.bf16.mxu0 %v3094_v10 }
 0x123   : > { %1851 = vmatmul.mubr.bf16.gmra.mrb[104].mxu1 %v3123_v15  ;;  %v3135_v15 = vld [vmem:[%s4121_s1 + $0x68] ss:$16 sps:$4 sm:$0xff]  }
 0x126   : > { %v1644_v18 = vpop.f32.mrb[0].mxu1 }
 0x127   : > { %v1646_v19 = vpop.f32.mrb[1].mxu1 }
 0x128   : > { %v1647_v20 = vpop.f32.mrb[2].mxu1 }
 0x129   : > { %1530 = vmatmul.mubr.bf16.gmra.mrb[108].mxu0 %v3098_v13  ;;  %v1649_v21 = vpop.f32.mrb[3].mxu1 }
 0x12a   : > { %1537 = vmatprep.mubr.bf16.mxu0 %v3100_v14 }
 0x12e   : > { %v1652_v24 = vpop.f32.mrb[4].mxu1 }
 0x12f   : > { %v1654_v25 = vpop.f32.mrb[5].mxu1 }
 0x130   : > { %v1655_v26 = vpop.f32.mrb[6].mxu1 }
 0x131   : > { %1538 = vmatmul.mubr.bf16.gmra.mrb[112].mxu0 %v3104_v16  ;;  %v1657_v27 = vpop.f32.mrb[7].mxu1 }
 0x132   : > { %1545 = vmatprep.mubr.bf16.mxu0 %v3106_v17  ;;  %v3136_v17 = vld [vmem:[%s4121_s1 + $0x8c] ss:$16 sps:$4 sm:$0xff]   ;;  %v3138_v27 = vld [vmem:[%s4121_s1 + $0x88] ss:$16 sps:$4 sm:$0xff]  }
 0x136   : > { %v1660_v30 = vpop.f32.mrb[8].mxu1 }
 0x137   : > { %v1662_v31 = vpop.f32.mrb[9].mxu1 }
 0x138   : > { %v1663_v32 = vpop.f32.mrb[10].mxu1 }
 0x139   : > { %1546 = vmatmul.mubr.bf16.gmra.mrb[116].mxu0 %v3110_v22  ;;  %v1665_v33 = vpop.f32.mrb[11].mxu1 }
 0x13a   : > { %1553 = vmatprep.mubr.bf16.mxu0 %v3112_v23 }
 0x13e   : > { %v1668_v36 = vpop.f32.mrb[12].mxu1 }
 0x13f   : > { %v1670_v37 = vpop.f32.mrb[13].mxu1 }
 0x140   : > { %v1671_v38 = vpop.f32.mrb[14].mxu1 }
 0x141   : > { %1554 = vmatmul.mubr.bf16.gmra.mrb[120].mxu0 %v3116_v28  ;;  %v1673_v39 = vpop.f32.mrb[15].mxu1 }
 0x142   : > { %1561 = vmatprep.mubr.bf16.mxu0 %v3118_v29 }
 0x146   : > { %v1676_v48 = vpop.f32.mrb[16].mxu1 }
 0x147   : > { %v1678_v49 = vpop.f32.mrb[17].mxu1 }
 0x148   : > { %v1679_v50 = vpop.f32.mrb[18].mxu1 }
 0x149   : > { %1562 = vmatmul.mubr.bf16.gmra.mrb[124].mxu0 %v3122_v34  ;;  %v1681_v51 = vpop.f32.mrb[19].mxu1 }
 0x14a   : > { %1602 = vmatprep.mubr.bf16.mxu0 %v3126_v35 }
 0x14c   : > { %v1355_v40 = vpop.f32.mrb[20].mxu0 }
 0x14d   : > { %v3775_v41 = vadd.f32 %v1644_v18, %v1355_v40  ;;  %v1357_v42 = vpop.f32.mrb[21].mxu0 }
 0x14e   : > { %v1358_v44 = vpop.f32.mrb[22].mxu0  ;;  %v1684_v60 = vpop.f32.mrb[20].mxu1 }
 0x14f   : > { %v3783_v46 = vadd.f32 %v1647_v20, %v1358_v44  ;;  %v1360_v47 = vpop.f32.mrb[23].mxu0  ;;  %v1686_v61 = vpop.f32.mrb[21].mxu1 }
 0x150   : > { %v1687_v62 = vpop.f32.mrb[22].mxu1 }
 0x151   : > { %1603 = vmatmul.mubr.bf16.vlgmr.msra.gmra.mrb[0].mxu0 %v3124_v43  ;;  %v1689_v63 = vpop.f32.mrb[23].mxu1 }
 0x152   : > { %1610 = vmatprep.mubr.bf16.mxu0 %v3127_v45 }
 0x154   : > { %v1363_v52 = vpop.f32.mrb[24].mxu0 }
 0x155   : > { %v3785_v53 = vadd.f32 %v1652_v24, %v1363_v52  ;;  %v1365_v54 = vpop.f32.mrb[25].mxu0 }
 0x156   : > { %v1366_v56 = vpop.f32.mrb[26].mxu0  ;;  %v1692_v8 = vpop.f32.mrb[24].mxu1 }
 0x157   : > { %v3793_v58 = vadd.f32 %v1655_v26, %v1366_v56  ;;  %v1368_v59 = vpop.f32.mrb[27].mxu0  ;;  %v1694_v9 = vpop.f32.mrb[25].mxu1 }
 0x158   : > { %v1695_v10 = vpop.f32.mrb[26].mxu1 }
 0x159   : > { %1611 = vmatmul.mubr.bf16.gmra.mrb[4].mxu0 %v3129_v55  ;;  %v1697_v11 = vpop.f32.mrb[27].mxu1 }
 0x15a   : > { %1618 = vmatprep.mubr.bf16.mxu0 %v3130_v57 }
 0x15c   : > { %v1371_v1 = vpop.f32.mrb[28].mxu0 }
 0x15d   : > { %v3795_v2 = vadd.f32 %v1660_v30, %v1371_v1  ;;  %v1373_v3 = vpop.f32.mrb[29].mxu0 }
 0x15e   : > { %v1374_v0 = vpop.f32.mrb[30].mxu0  ;;  %v1700_v20 = vpop.f32.mrb[28].mxu1 }
 0x15f   : > { %v3803_v6 = vadd.f32 %v1663_v32, %v1374_v0  ;;  %v1376_v7 = vpop.f32.mrb[31].mxu0  ;;  %v1702_v21 = vpop.f32.mrb[29].mxu1 }
 0x160   : > { %v1703_v22 = vpop.f32.mrb[30].mxu1 }
 0x161   : > { %1619 = vmatmul.mubr.bf16.gmra.mrb[8].mxu0 %v3132_v4  ;;  %v1705_v23 = vpop.f32.mrb[31].mxu1 }
 0x162   : > { %1626 = vmatprep.mubr.bf16.mxu0 %v3133_v5 }
 0x164   : > { %v1379_v12 = vpop.f32.mrb[32].mxu0 }
 0x165   : > { %v3805_v13 = vadd.f32 %v1668_v36, %v1379_v12  ;;  %v1381_v14 = vpop.f32.mrb[33].mxu0 }
 0x166   : > { %v1382_v16 = vpop.f32.mrb[34].mxu0  ;;  %v1708_v31 = vpop.f32.mrb[32].mxu1 }
 0x167   : > { %v3813_v18 = vadd.f32 %v1671_v38, %v1382_v16  ;;  %v1384_v19 = vpop.f32.mrb[35].mxu0  ;;  %v1710_v32 = vpop.f32.mrb[33].mxu1 }
 0x168   : > { %v1711_v33 = vpop.f32.mrb[34].mxu1 }
 0x169   : > { %1627 = vmatmul.mubr.bf16.gmra.mrb[12].mxu0 %v3135_v15  ;;  %v1713_v34 = vpop.f32.mrb[35].mxu1 }
 0x16a   : > { %1634 = vmatprep.mubr.bf16.mxu0 %v3136_v17 }
 0x16c   : > { %v1387_v24 = vpop.f32.mrb[36].mxu0 }
 0x16d   : > { %v3815_v25 = vadd.f32 %v1676_v48, %v1387_v24  ;;  %v1389_v26 = vpop.f32.mrb[37].mxu0 }
 0x16e   : > { %v1390_v28 = vpop.f32.mrb[38].mxu0  ;;  %v1716_v42 = vpop.f32.mrb[36].mxu1 }
 0x16f   : > { %v3820_v29 = vadd.f32 %v1679_v50, %v1390_v28  ;;  %v1392_v30 = vpop.f32.mrb[39].mxu0  ;;  %v1718_v43 = vpop.f32.mrb[37].mxu1 }
 0x170   : > { %v1719_v44 = vpop.f32.mrb[38].mxu1 }
 0x171   : > { %1635 = vmatmul.mubr.bf16.gmra.mrb[16].mxu0 %v3138_v27  ;;  %v1721_v45 = vpop.f32.mrb[39].mxu1 }
 0x174   : > { %v1395_v35 = vpop.f32.mrb[40].mxu0 }
 0x175   : > { %v3822_v36 = vadd.f32 %v1684_v60, %v1395_v35  ;;  %v1397_v37 = vpop.f32.mrb[41].mxu0 }
 0x176   : > { %v1398_v38 = vpop.f32.mrb[42].mxu0  ;;  %v1724_v54 = vpop.f32.mrb[40].mxu1 }
 0x177   : > { %v3824_v39 = vadd.f32 %v1687_v62, %v1398_v38  ;;  %v1400_v40 = vpop.f32.mrb[43].mxu0  ;;  %v1726_v55 = vpop.f32.mrb[41].mxu1 }
 0x178   : > { %v1727_v56 = vpop.f32.mrb[42].mxu1 }
 0x179   : > { %v1729_v57 = vpop.f32.mrb[43].mxu1 }
 0x17c   : > { %v1403_v47 = vpop.f32.mrb[44].mxu0 }
 0x17d   : > { %v3826_v48 = vadd.f32 %v1692_v8, %v1403_v47  ;;  %v1405_v49 = vpop.f32.mrb[45].mxu0 }
 0x17e   : > { %v1406_v50 = vpop.f32.mrb[46].mxu0  ;;  %v1732_v3 = vpop.f32.mrb[44].mxu1 }
 0x17f   : > { %v3828_v51 = vadd.f32 %v1695_v10, %v1406_v50  ;;  %v1408_v52 = vpop.f32.mrb[47].mxu0  ;;  %v1734_v4 = vpop.f32.mrb[45].mxu1 }
 0x180   : > { %v1735_v0 = vpop.f32.mrb[46].mxu1 }
 0x181   : > { %v1737_v5 = vpop.f32.mrb[47].mxu1 }
 0x184   : > { %v1411_v59 = vpop.f32.mrb[48].mxu0 }
 0x185   : > { %v3830_v60 = vadd.f32 %v1700_v20, %v1411_v59  ;;  %v1413_v61 = vpop.f32.mrb[49].mxu0 }
 0x186   : > { %v1414_v62 = vpop.f32.mrb[50].mxu0  ;;  %v1740_v14 = vpop.f32.mrb[48].mxu1 }
 0x187   : > { %v3832_v63 = vadd.f32 %v1703_v22, %v1414_v62  ;;  %v1416_v1 = vpop.f32.mrb[51].mxu0  ;;  %v1742_v15 = vpop.f32.mrb[49].mxu1 }
 0x188   : > { %v1743_v16 = vpop.f32.mrb[50].mxu1 }
 0x189   : > { %v1745_v17 = vpop.f32.mrb[51].mxu1 }
 0x18c   : > { %v1419_v7 = vpop.f32.mrb[52].mxu0 }
 0x18d   : > { %v3834_v8 = vadd.f32 %v1708_v31, %v1419_v7  ;;  %v1421_v9 = vpop.f32.mrb[53].mxu0 }
 0x18e   : > { %v1422_v10 = vpop.f32.mrb[54].mxu0  ;;  %v1748_v26 = vpop.f32.mrb[52].mxu1 }
 0x18f   : > { %v3836_v11 = vadd.f32 %v1711_v33, %v1422_v10  ;;  %v1424_v12 = vpop.f32.mrb[55].mxu0  ;;  %v1750_v27 = vpop.f32.mrb[53].mxu1 }
 0x190   : > { %v1751_v28 = vpop.f32.mrb[54].mxu1 }
 0x191   : > { %v1753_v30 = vpop.f32.mrb[55].mxu1 }
 0x194   : > { %v1427_v19 = vpop.f32.mrb[56].mxu0 }
 0x195   : > { %v3838_v20 = vadd.f32 %v1716_v42, %v1427_v19  ;;  %v1429_v21 = vpop.f32.mrb[57].mxu0 }
 0x196   : > { %v1430_v22 = vpop.f32.mrb[58].mxu0  ;;  %v1756_v38 = vpop.f32.mrb[56].mxu1 }
 0x197   : > { %v3840_v23 = vadd.f32 %v1719_v44, %v1430_v22  ;;  %v1432_v24 = vpop.f32.mrb[59].mxu0  ;;  %v1758_v40 = vpop.f32.mrb[57].mxu1 }
 0x198   : > { %v1759_v42 = vpop.f32.mrb[58].mxu1 }
 0x199   : > { %v1761_v43 = vpop.f32.mrb[59].mxu1 }
 0x19c   : > { %v1435_v31 = vpop.f32.mrb[60].mxu0 }
 0x19d   : > { %v3842_v32 = vadd.f32 %v1724_v54, %v1435_v31  ;;  %v1437_v33 = vpop.f32.mrb[61].mxu0 }
 0x19e   : > { %v1438_v34 = vpop.f32.mrb[62].mxu0  ;;  %v1764_v55 = vpop.f32.mrb[60].mxu1 }
 0x19f   : > { %v3844_v35 = vadd.f32 %v1727_v56, %v1438_v34  ;;  %v1440_v37 = vpop.f32.mrb[63].mxu0  ;;  %v1766_v54 = vpop.f32.mrb[61].mxu1 }
 0x1a0   : > { %v1767_v57 = vpop.f32.mrb[62].mxu1 }
 0x1a1   : > { %v1769_v59 = vpop.f32.mrb[63].mxu1 }
 0x1a4   : > { %v1443_v45 = vpop.f32.mrb[64].mxu0 }
 0x1a5   : > { %v3846_v44 = vadd.f32 %v1732_v3, %v1443_v45  ;;  %v1445_v47 = vpop.f32.mrb[65].mxu0 }
 0x1a6   : > { %v1446_v49 = vpop.f32.mrb[66].mxu0  ;;  %v1772_v7 = vpop.f32.mrb[64].mxu1 }
 0x1a7   : > { %v3848_v50 = vadd.f32 %v1735_v0, %v1446_v49  ;;  %v1448_v52 = vpop.f32.mrb[67].mxu0  ;;  %v1774_v3 = vpop.f32.mrb[65].mxu1 }
 0x1a8   : > { %v1775_v9 = vpop.f32.mrb[66].mxu1 }
 0x1a9   : > { %v1777_v10 = vpop.f32.mrb[67].mxu1 }
 0x1ac   : > { %v1451_v61 = vpop.f32.mrb[68].mxu0 }
 0x1ad   : > { %v3850_v56 = vadd.f32 %v1740_v14, %v1451_v61  ;;  %v1453_v62 = vpop.f32.mrb[69].mxu0 }
 0x1ae   : > { %v1454_v1 = vpop.f32.mrb[70].mxu0  ;;  %v1780_v22 = vpop.f32.mrb[68].mxu1 }
 0x1af   : > { %v3852_v4 = vadd.f32 %v1743_v16, %v1454_v1  ;;  %v1456_v5 = vpop.f32.mrb[71].mxu0  ;;  %v1782_v14 = vpop.f32.mrb[69].mxu1 }
 0x1b0   : > { %v1783_v24 = vpop.f32.mrb[70].mxu1 }
 0x1b1   : > { %v1785_v27 = vpop.f32.mrb[71].mxu1 }
 0x1b4   : > { %v1459_v12 = vpop.f32.mrb[72].mxu0 }
 0x1b5   : > { %v3854_v0 = vadd.f32 %v1748_v26, %v1459_v12  ;;  %v1461_v15 = vpop.f32.mrb[73].mxu0  ;;  %v1869_v12 = vmul.f32 %v3775_v41, %v3775_v41 }
 0x1b6   : > { %v1462_v17 = vpop.f32.mrb[74].mxu0  ;;  %v1788_v40 = vpop.f32.mrb[72].mxu1 }
 0x1b7   : > { %v3856_v19 = vadd.f32 %v1751_v28, %v1462_v17  ;;  %v1464_v21 = vpop.f32.mrb[75].mxu0  ;;  %v1790_v26 = vpop.f32.mrb[73].mxu1 }
 0x1b8   : > { %v1791_v43 = vpop.f32.mrb[74].mxu1 }
 0x1b9   : > { %v1793_v45 = vpop.f32.mrb[75].mxu1 }
 0x1bc   : > { %v1467_v30 = vpop.f32.mrb[76].mxu0 }
 0x1bd   : > { %v3858_v16 = vadd.f32 %v1756_v38, %v1467_v30  ;;  %v1469_v31 = vpop.f32.mrb[77].mxu0 }
 0x1be   : > { %v1470_v33 = vpop.f32.mrb[78].mxu0  ;;  %v1796_v61 = vpop.f32.mrb[76].mxu1 }
 0x1bf   : > { %v3860_v34 = vadd.f32 %v1759_v42, %v1470_v33  ;;  %v1472_v37 = vpop.f32.mrb[79].mxu0  ;;  %v1798_v38 = vpop.f32.mrb[77].mxu1 }
 0x1c0   : > { %v1799_v62 = vpop.f32.mrb[78].mxu1 }
 0x1c1   : > { %v1801_v1 = vpop.f32.mrb[79].mxu1 }
 0x1c2   : > { %v1872_v1 = vmul.f32 %v3793_v58, %v3793_v58 }
 0x1c4   : > { %v1475_v47 = vpop.f32.mrb[80].mxu0 }
 0x1c5   : > { %v3862_v28 = vadd.f32 %v1764_v55, %v1475_v47  ;;  %v1477_v49 = vpop.f32.mrb[81].mxu0  ;;  %v1871_v47 = vmul.f32 %v3785_v53, %v3785_v53 }
 0x1c6   : > { %v1478_v52 = vpop.f32.mrb[82].mxu0  ;;  %v1804_v21 = vpop.f32.mrb[80].mxu1 }
 0x1c7   : > { %v3864_v54 = vadd.f32 %v1767_v57, %v1478_v52  ;;  %v1480_v59 = vpop.f32.mrb[83].mxu0  ;;  %v1806_v14 = vpop.f32.mrb[81].mxu1  ;;  %v1870_v57 = vmul.f32 %v3783_v46, %v3783_v46 }
 0x1c8   : > { %v3872_v31 = vpop.f32.mrb[82].mxu1 }
 0x1c9   : > { %v1809_v33 = vpop.f32.mrb[83].mxu1 }
 0x1cc   : > { %v1483_v5 = vpop.f32.mrb[84].mxu0 }
 0x1cd   : > { %v1773_v42 = vadd.f32 %v1772_v7, %v1483_v5  ;;  %v1485_v3 = vpop.f32.mrb[85].mxu0 }
 0x1ce   : > { %v1486_v10 = vpop.f32.mrb[86].mxu0  ;;  %v3880_v59 = vpop.f32.mrb[84].mxu1 }
 0x1cf   : > { %v1901_v15 = vmul.f32 %v1773_v42, %v1773_v42  ;;  %v1776_v17 = vadd.f32 %v1775_v9, %v1486_v10  ;;  %v1488_v55 = vpop.f32.mrb[87].mxu0  ;;  %v1814_v38 = vpop.f32.mrb[85].mxu1 }
 0x1d0   : > { %v3886_v3 = vpop.f32.mrb[86].mxu1  ;;  %v1873_v55 = vmul.f32 %v3795_v2, %v3795_v2 }
 0x1d1   : > { %v3870_v27 = vadd.f32 %v1901_v15, %v1869_v12  ;;  %v1902_v30 = vmul.f32 %v1776_v17, %v1776_v17  ;;  %v1817_v10 = vpop.f32.mrb[87].mxu1 }
 0x1d3   : > { %v3874_v7 = vadd.f32 %v1902_v30, %v1870_v57 }
 0x1d4   : > { %v1491_v37 = vpop.f32.mrb[88].mxu0 }
 0x1d5   : > { %v1968_v41 = vpack.c.bf16 %v3874_v7, %v3870_v27  ;;  %v1781_v26 = vadd.f32 %v1780_v22, %v1491_v37  ;;  %v1493_v9 = vpop.f32.mrb[89].mxu0  ;;  %v3141_v22 = vld [vmem:[%s4122_s2 + $0x4] ss:$8 sps:$4 sm:$0xff]  }
 0x1d6   : > { %v1494_v45 = vpop.f32.mrb[90].mxu0  ;;  %2051 = vmatprep.mubr.bf16.mxu1 %v3141_v22  ;;  %v1820_v33 = vpop.f32.mrb[88].mxu1  ;;  %v3185_v27 = vld [vmem:[%s3277_s27 + $0x60] sm:$0xff]   ;;  %v3186_v7 = vld [vmem:[%s3277_s27 + $0x68] sm:$0xff]  }
 0x1d7   : > { %v1903_v49 = vmul.f32 %v1781_v26, %v1781_v26  ;;  %v1784_v46 = vadd.f32 %v1783_v24, %v1494_v45  ;;  %v1496_v52 = vpop.f32.mrb[91].mxu0  ;;  %v1822_v37 = vpop.f32.mrb[89].mxu1  ;;  %v1874_v26 = vmul.f32 %v3803_v6, %v3803_v6 }
 0x1d9   : > { %v3884_v5 = vadd.f32 %v1903_v49, %v1871_v47  ;;  %v1904_v42 = vmul.f32 %v1784_v46, %v1784_v46  ;;  %v1823_v47 = vpop.f32.mrb[90].mxu1 }
 0x1da   : > { %v1825_v49 = vpop.f32.mrb[91].mxu1 }
 0x1db   : > { %v3891_v53 = vadd.f32 %v1904_v42, %v1872_v1  ;;  %v1875_v1 = vmul.f32 %v3805_v13, %v3805_v13  ;;  %v1877_v13 = vmul.f32 %v3815_v25, %v3815_v25 }
 0x1dc   : > { %v1499_v24 = vpop.f32.mrb[92].mxu0 }
 0x1dd   : > { %v1969_v12 = vpack.c.bf16 %v3891_v53, %v3884_v5  ;;  %v1789_v15 = vadd.f32 %v1788_v40, %v1499_v24  ;;  %v1501_v17 = vpop.f32.mrb[93].mxu0  ;;  %v3145_v5 = vld [vmem:[%s4122_s2 + $0x24] ss:$8 sps:$4 sm:$0xff]   ;;  %v3187_v53 = vld [vmem:[%s3277_s27 + $0x70] sm:$0xff]  }
 0x1de   : > { %v1502_v58 = vpop.f32.mrb[94].mxu0  ;;  %v1828_v10 = vpop.f32.mrb[92].mxu1 }
 0x1df   : > { %v1905_v14 = vmul.f32 %v1789_v15, %v1789_v15  ;;  %v1792_v57 = vadd.f32 %v1791_v43, %v1502_v58  ;;  %v1504_v30 = vpop.f32.mrb[95].mxu0  ;;  %v1830_v24 = vpop.f32.mrb[93].mxu1  ;;  %v1876_v15 = vmul.f32 %v3813_v18, %v3813_v18 }
 0x1e1   : > { %v3899_v9 = vadd.f32 %v1905_v14, %v1873_v55  ;;  %v1906_v45 = vmul.f32 %v1792_v57, %v1792_v57  ;;  %v1831_v55 = vpop.f32.mrb[94].mxu1 }
 0x1e2   : > { %v1833_v14 = vpop.f32.mrb[95].mxu1 }
 0x1e3   : > { %v3901_v46 = vadd.f32 %v1906_v45, %v1874_v26 }
 0x1e4   : > { %v1507_v40 = vpop.f32.mrb[96].mxu0 }
 0x1e5   : > { %v1970_v52 = vpack.c.bf16 %v3901_v46, %v3899_v9  ;;  %v1797_v2 = vadd.f32 %v1796_v61, %v1507_v40  ;;  %v1509_v38 = vpop.f32.mrb[97].mxu0  ;;  %v3147_v9 = vld [vmem:[%s4122_s2 + $0x20] ss:$8 sps:$4 sm:$0xff]   ;;  %v3148_v46 = vld [vmem:[%s4122_s2 + $0x34] ss:$8 sps:$4 sm:$0xff]  }
 0x1e6   : > { %v1510_v43 = vpop.f32.mrb[98].mxu0  ;;  %v1878_v38 = vmul.f32 %v3820_v29, %v3820_v29 }
 0x1e7   : > { %v1907_v42 = vmul.f32 %v1797_v2, %v1797_v2  ;;  %v1800_v22 = vadd.f32 %v1799_v62, %v1510_v43  ;;  %v1512_v6 = vpop.f32.mrb[99].mxu0  ;;  %v1836_v2 = vpop.f32.mrb[96].mxu1 }
 0x1e8   : > { %v1838_v18 = vpop.f32.mrb[97].mxu1 }
 0x1e9   : > { %v1939_v17 = vadd.f32 %v1907_v42, %v1875_v1  ;;  %v1908_v58 = vmul.f32 %v1800_v22, %v1800_v22  ;;  %v1881_v18 = vmul.f32 %v3826_v48, %v3826_v48 }
 0x1eb   : > { %v1940_v57 = vadd.f32 %v1908_v58, %v1876_v15 }
 0x1ec   : > { %v1515_v30 = vpop.f32.mrb[100].mxu0 }
 0x1ed   : > { %v1805_v61 = vadd.f32 %v1804_v21, %v1515_v30  ;;  %v1517_v37 = vpop.f32.mrb[101].mxu0  ;;  %v1971_v26 = vpack.c.bf16 %v1940_v57, %v1939_v17  ;;  %v1839_v21 = vpop.f32.mrb[98].mxu1  ;;  %v1879_v17 = vmul.f32 %v3822_v36, %v3822_v36 }
 0x1ee   : > { %v1518_v45 = vpop.f32.mrb[102].mxu0  ;;  %v1841_v42 = vpop.f32.mrb[99].mxu1 }
 0x1ef   : > { %v1909_v62 = vmul.f32 %v1805_v61, %v1805_v61  ;;  %v1808_v49 = vadd.f32 %v3872_v31, %v1518_v45  ;;  %v1520_v40 = vpop.f32.mrb[103].mxu0  ;;  %2677 = vmatprep.subr.bf16.mxu1 %v1971_v26  ;;  %v1844_v57 = vpop.f32.mrb[100].mxu1  ;;  %v1880_v61 = vmul.f32 %v3824_v39, %v3824_v39 }
 0x1f0   : > { %v1846_v30 = vpop.f32.mrb[101].mxu1 }
 0x1f1   : > { %v3914_v43 = vadd.f32 %v1909_v62, %v1877_v13  ;;  %v1910_v1 = vmul.f32 %v1808_v49, %v1808_v49  ;;  %v1847_v26 = vpop.f32.mrb[102].mxu1 }
 0x1f2   : > { %v1849_v45 = vpop.f32.mrb[103].mxu1 }
 0x1f3   : > { %v3916_v22 = vadd.f32 %v1910_v1, %v1878_v38 }
 0x1f4   : > { %v1523_v6 = vpop.f32.mrb[104].mxu0 }
 0x1f5   : > { %v1813_v25 = vadd.f32 %v3880_v59, %v1523_v6  ;;  %v1525_v24 = vpop.f32.mrb[105].mxu0  ;;  %v1972_v31 = vpack.c.bf16 %v3916_v22, %v3914_v43 }
 0x1f6   : > { %v1526_v15 = vpop.f32.mrb[106].mxu0  ;;  %v1852_v42 = vpop.f32.mrb[104].mxu1 }
 0x1f7   : > { %v1911_v58 = vmul.f32 %v1813_v25, %v1813_v25  ;;  %v1816_v29 = vadd.f32 %v3886_v3, %v1526_v15  ;;  %v1528_v14 = vpop.f32.mrb[107].mxu0  ;;  %v1854_v6 = vpop.f32.mrb[105].mxu1  ;;  %v1882_v25 = vmul.f32 %v3828_v51, %v3828_v51 }
 0x1f9   : > { %v3926_v37 = vadd.f32 %v1911_v58, %v1879_v17  ;;  %v1912_v59 = vmul.f32 %v1816_v29, %v1816_v29 }
 0x1fb   : > { %v3928_v13 = vadd.f32 %v1912_v59, %v1880_v61  ;;  %v1883_v61 = vmul.f32 %v3830_v60, %v3830_v60  ;;  %v1885_v60 = vmul.f32 %v3834_v8, %v3834_v8  ;;  %v1887_v8 = vmul.f32 %v3838_v20, %v3838_v20 }
 0x1fc   : > { %v1531_v62 = vpop.f32.mrb[108].mxu0  ;;  %v1889_v20 = vmul.f32 %v3842_v32, %v3842_v32 }
 0x1fd   : > { %v1821_v49 = vadd.f32 %v1820_v33, %v1531_v62  ;;  %v1533_v40 = vpop.f32.mrb[109].mxu0  ;;  %v1973_v36 = vpack.c.bf16 %v3928_v13, %v3926_v37  ;;  %v1855_v33 = vpop.f32.mrb[106].mxu1  ;;  %v1884_v62 = vmul.f32 %v3832_v63, %v3832_v63  ;;  %v1886_v63 = vmul.f32 %v3836_v11, %v3836_v11 }
 0x1fe   : > { %v1534_v3 = vpop.f32.mrb[110].mxu0  ;;  %v1857_v17 = vpop.f32.mrb[107].mxu1  ;;  %v1888_v11 = vmul.f32 %v3840_v23, %v3840_v23  ;;  %v1890_v23 = vmul.f32 %v3844_v35, %v3844_v35 }
 0x1ff   : > { %v1913_v38 = vmul.f32 %v1821_v49, %v1821_v49  ;;  %v1824_v1 = vadd.f32 %v1823_v47, %v1534_v3  ;;  %v1536_v39 = vpop.f32.mrb[111].mxu0 }
 0x201   : > { %v3936_v24 = vadd.f32 %v1913_v38, %v1881_v18  ;;  %v1914_v15 = vmul.f32 %v1824_v1, %v1824_v1 }
 0x203   : > { %v3938_v58 = vadd.f32 %v1914_v15, %v1882_v25 }
 0x204   : > { %v1539_v29 = vpop.f32.mrb[112].mxu0 }
 0x205   : > { %v1829_v14 = vadd.f32 %v1828_v10, %v1539_v29  ;;  %v1541_v30 = vpop.f32.mrb[113].mxu0  ;;  %v1974_v48 = vpack.c.bf16 %v3938_v58, %v3936_v24 }
 0x206   : > { %v1542_v47 = vpop.f32.mrb[114].mxu0 }
 0x207   : > { %v1915_v59 = vmul.f32 %v1829_v14, %v1829_v14  ;;  %v1832_v45 = vadd.f32 %v1831_v55, %v1542_v47  ;;  %v1544_v51 = vpop.f32.mrb[115].mxu0 }
 0x209   : > { %v3946_v49 = vadd.f32 %v1915_v59, %v1883_v61  ;;  %v1916_v40 = vmul.f32 %v1832_v45, %v1832_v45 }
 0x20b   : > { %v3948_v3 = vadd.f32 %v1916_v40, %v1884_v62 }
 0x20c   : > { %v1547_v10 = vpop.f32.mrb[116].mxu0 }
 0x20d   : > { %v1837_v18 = vadd.f32 %v1836_v2, %v1547_v10  ;;  %v1549_v38 = vpop.f32.mrb[117].mxu0  ;;  %v1975_v1 = vpack.c.bf16 %v3948_v3, %v3946_v49  ;;  %v3190_v49 = vld [vmem:[%s3277_s27 + $0x88] sm:$0xff]   ;;  %v3150_v3 = vld [vmem:[%s4122_s2 + $0x30] ss:$8 sps:$4 sm:$0xff]  }
 0x20e   : > { %v1550_v39 = vpop.f32.mrb[118].mxu0 }
 0x20f   : > { %v1917_v55 = vmul.f32 %v1837_v18, %v1837_v18  ;;  %v1840_v6 = vadd.f32 %v1839_v21, %v1550_v39  ;;  %v1552_v25 = vpop.f32.mrb[119].mxu0 }
 0x211   : > { %v3956_v15 = vadd.f32 %v1917_v55, %v1885_v60  ;;  %v1918_v17 = vmul.f32 %v1840_v6, %v1840_v6 }
 0x213   : > { %v3958_v29 = vadd.f32 %v1918_v17, %v1886_v63  ;;  %v1891_v17 = vmul.f32 %v3846_v44, %v3846_v44 }
 0x214   : > { %v1555_v2 = vpop.f32.mrb[120].mxu0 }
 0x215   : > { %v1845_v14 = vadd.f32 %v1844_v57, %v1555_v2  ;;  %v1557_v30 = vpop.f32.mrb[121].mxu0  ;;  %v1976_v47 = vpack.c.bf16 %v3958_v29, %v3956_v15  ;;  %v3191_v15 = vld [vmem:[%s3277_s27 + $0x90] sm:$0xff]   ;;  %v3192_v29 = vld [vmem:[%s3277_s27 + $0x98] sm:$0xff]  }
 0x216   : > { %v1558_v61 = vpop.f32.mrb[122].mxu0 }
 0x217   : > { %v1919_v21 = vmul.f32 %v1845_v14, %v1845_v14  ;;  %v1848_v59 = vadd.f32 %v1847_v26, %v1558_v61  ;;  %v1560_v45 = vpop.f32.mrb[123].mxu0 }
 0x219   : > { %v3966_v51 = vadd.f32 %v1919_v21, %v1887_v8  ;;  %v1920_v62 = vmul.f32 %v1848_v59, %v1848_v59 }
 0x21b   : > { %v3968_v40 = vadd.f32 %v1920_v62, %v1888_v11  ;;  %v1893_v11 = vmul.f32 %v3850_v56, %v3850_v56  ;;  %v1895_v56 = vmul.f32 %v3854_v0, %v3854_v0  ;;  %v1897_v0 = vmul.f32 %v3858_v16, %v3858_v16 }
 0x21c   : > { %v1563_v57 = vpop.f32.mrb[124].mxu0  ;;  %v1899_v16 = vmul.f32 %v3862_v28, %v3862_v28  ;;  %v3139_v28 = vld [vmem:[%s4122_s2] ss:$8 sps:$4 sm:$0xff]  }
 0x21d   : > { %v1853_v10 = vadd.f32 %v1852_v42, %v1563_v57  ;;  %v1565_v18 = vpop.f32.mrb[125].mxu0  ;;  %v1977_v38 = vpack.c.bf16 %v3968_v40, %v3966_v51  ;;  %v3153_v51 = vld [vmem:[%s4123_s3 + $0x10] sm:$0xff]   ;;  %v3154_v40 = vld [vmem:[%s4123_s3 + $0x18] sm:$0xff]  }
 0x21e   : > { %v1566_v39 = vpop.f32.mrb[126].mxu0 }
 0x21f   : > { %v1921_v26 = vmul.f32 %v1853_v10, %v1853_v10  ;;  %v1856_v60 = vadd.f32 %v1855_v33, %v1566_v39  ;;  %v1568_v55 = vpop.f32.mrb[127].mxu0  ;;  %v1892_v33 = vmul.f32 %v3848_v50, %v3848_v50  ;;  %v1894_v50 = vmul.f32 %v3852_v4, %v3852_v4 }
 0x220   : > { %v1896_v4 = vmul.f32 %v3856_v19, %v3856_v19  ;;  %v1898_v19 = vmul.f32 %v3860_v34, %v3860_v34  ;;  %v1900_v34 = vmul.f32 %v3864_v54, %v3864_v54  ;;  %v3142_v54 = vld [vmem:[%s4122_s2 + $0x14] ss:$8 sps:$4 sm:$0xff]  }
 0x221   : > { %v3976_v6 = vadd.f32 %v1921_v26, %v1889_v20  ;;  %v1922_v25 = vmul.f32 %v1856_v60, %v1856_v60 }
 0x223   : > { %v3978_v63 = vadd.f32 %v1922_v25, %v1890_v23 }
 0x224   : > { %v1604_v42 = vpop.f32.mrb[0].mxu0 }
 0x225   : > { %v1859_v2 = vmul.f32 %v1604_v42, %v1604_v42  ;;  %v1606_v14 = vpop.f32.mrb[1].mxu0  ;;  %v1978_v32 = vpack.c.bf16 %v3978_v63, %v3976_v6  ;;  %v3156_v6 = vld [vmem:[%s4123_s3 + $0x28] sm:$0xff]   ;;  %v3157_v63 = vld [vmem:[%s4123_s3 + $0x30] sm:$0xff]  }
 0x226   : > { %v1607_v30 = vpop.f32.mrb[2].mxu0 }
 0x227   : > { %v1923_v61 = vadd.f32 %v1891_v17, %v1859_v2  ;;  %v1860_v35 = vmul.f32 %v1607_v30, %v1607_v30  ;;  %v1609_v8 = vpop.f32.mrb[3].mxu0 }
 0x229   : > { %v1924_v21 = vadd.f32 %v1892_v33, %v1860_v35 }
 0x22b   : > { %v1963_v59 = vpack.c.bf16 %v1924_v21, %v1923_v61 }
 0x22c   : > { %v1612_v45 = vpop.f32.mrb[4].mxu0 }
 0x22d   : > { %v1861_v62 = vmul.f32 %v1612_v45, %v1612_v45  ;;  %v1614_v44 = vpop.f32.mrb[5].mxu0  ;;  %2678 = vmatpush3.bf16.msra.mxu1 %v1963_v59 }
 0x22e   : > { %v1615_v57 = vpop.f32.mrb[6].mxu0  ;;  %2679 = vmatprep.subr.bf16.mxu1 %v1972_v31  ;;  %v3159_v44 = vld [vmem:[%s4124_s4] sm:$0xff]  }
 0x22f   : > { %v1925_v10 = vadd.f32 %v1893_v11, %v1861_v62  ;;  %v1862_v18 = vmul.f32 %v1615_v57, %v1615_v57  ;;  %v1617_v39 = vpop.f32.mrb[7].mxu0 }
 0x231   : > { %v1926_v20 = vadd.f32 %v1894_v50, %v1862_v18 }
 0x233   : > { %v1964_v26 = vpack.c.bf16 %v1926_v20, %v1925_v10 }
 0x234   : > { %v1620_v60 = vpop.f32.mrb[8].mxu0 }
 0x235   : > { %v1863_v55 = vmul.f32 %v1620_v60, %v1620_v60  ;;  %v1622_v23 = vpop.f32.mrb[9].mxu0  ;;  %2680 = vmatpush3.bf16.msra.mxu1 %v1964_v26 }
 0x236   : > { %v1623_v25 = vpop.f32.mrb[10].mxu0  ;;  %2681 = vmatprep.subr.bf16.mxu1 %v1973_v36 }
 0x237   : > { %v1927_v43 = vadd.f32 %v1895_v56, %v1863_v55  ;;  %v1864_v22 = vmul.f32 %v1623_v25, %v1623_v25  ;;  %v1625_v31 = vpop.f32.mrb[11].mxu0 }
 0x239   : > { %v1928_v42 = vadd.f32 %v1896_v4, %v1864_v22 }
 0x23b   : > { %v1965_v17 = vpack.c.bf16 %v1928_v42, %v1927_v43 }
 0x23c   : > { %v1628_v2 = vpop.f32.mrb[12].mxu0 }
 0x23d   : > { %v1865_v14 = vmul.f32 %v1628_v2, %v1628_v2  ;;  %v1630_v30 = vpop.f32.mrb[13].mxu0  ;;  %2682 = vmatpush3.bf16.msra.mxu1 %v1965_v17 }
 0x23e   : > { %v1631_v33 = vpop.f32.mrb[14].mxu0  ;;  %2683 = vmatprep.subr.bf16.mxu1 %v1974_v48 }
 0x23f   : > { %v1929_v37 = vadd.f32 %v1897_v0, %v1865_v14  ;;  %v1866_v13 = vmul.f32 %v1631_v33, %v1631_v33  ;;  %v1633_v36 = vpop.f32.mrb[15].mxu0 }
 0x241   : > { %v1930_v61 = vadd.f32 %v1898_v19, %v1866_v13 }
 0x243   : > { %v1966_v35 = vpack.c.bf16 %v1930_v61, %v1929_v37 }
 0x244   : > { %v1636_v8 = vpop.f32.mrb[16].mxu0 }
 0x245   : > { %v1867_v21 = vmul.f32 %v1636_v8, %v1636_v8  ;;  %v1638_v59 = vpop.f32.mrb[17].mxu0  ;;  %2684 = vmatpush3.bf16.msra.mxu1 %v1966_v35 }
 0x246   : > { %v1639_v45 = vpop.f32.mrb[18].mxu0  ;;  %2685 = vmatprep.subr.bf16.mxu1 %v1975_v1  ;;  %v3151_v1 = vld [vmem:[%s4123_s3] sm:$0xff]  }
 0x247   : > { %v1931_v24 = vadd.f32 %v1899_v16, %v1867_v21  ;;  %v1868_v58 = vmul.f32 %v1639_v45, %v1639_v45  ;;  %v1641_v48 = vpop.f32.mrb[19].mxu0 }
 0x249   : > { %v1932_v11 = vadd.f32 %v1900_v34, %v1868_v58 }
 0x24b   : > { %v1967_v62 = vpack.c.bf16 %v1932_v11, %v1931_v24 }
 0x24d   : > { %2686 = vmatpush3.bf16.msra.mxu1 %v1967_v62 }
 0x24e   : > { %2687 = vmatprep.subr.bf16.mxu1 %v1976_v47  ;;  %v3152_v47 = vld [vmem:[%s4123_s3 + $0x8] sm:$0xff]  }
 0x251   : > { %2688 = vmatpush3.bf16.msra.mxu1 %v1968_v41  ;;  %v3144_v41 = vld [vmem:[%s4122_s2 + $0x10] ss:$8 sps:$4 sm:$0xff]  }
 0x252   : > { %2689 = vmatprep.subr.bf16.mxu1 %v1977_v38  ;;  %v3155_v38 = vld [vmem:[%s4123_s3 + $0x20] sm:$0xff]  }
 0x255   : > { %2690 = vmatpush3.bf16.msra.mxu1 %v1969_v12  ;;  %v3188_v12 = vld [vmem:[%s3277_s27 + $0x78] sm:$0xff]  }
 0x256   : > { %2691 = vmatprep.subr.bf16.mxu1 %v1978_v32  ;;  %v3158_v32 = vld [vmem:[%s4123_s3 + $0x38] sm:$0xff]  }
 0x259   : > { %2692 = vmatpush3.bf16.msra.mxu1 %v1970_v52  ;;  %v3189_v52 = vld [vmem:[%s3277_s27 + $0x80] sm:$0xff]  }
 0x25a   : > { %2739 = vmatprep.subr.bf16.mxu1 %v3185_v27 }
 0x25c   : > { %2052 = vmatmul.mubr.bf16.vlgmr.msra.gmra.mrb[108].mxu1 %v3139_v28 }
 0x25d   : > { %2740 = vmatpush3.bf16.msra.mxu1 %v3185_v27  ;;  %2059 = vmatprep.mubr.bf16.mxu1 %v3142_v54 }
 0x25e   : > { %2741 = vmatprep.subr.bf16.mxu1 %v3186_v7 }
 0x261   : > { %2742 = vmatpush3.bf16.msra.mxu1 %v3186_v7 }
 0x262   : > { %2743 = vmatprep.subr.bf16.mxu1 %v3187_v53 }
 0x264   : > { %2060 = vmatmul.mubr.bf16.gmra.mrb[112].mxu1 %v3144_v41 }
 0x265   : > { %2744 = vmatpush3.bf16.msra.mxu1 %v3187_v53  ;;  %2067 = vmatprep.mubr.bf16.mxu1 %v3145_v5 }
 0x266   : > { %2745 = vmatprep.subr.bf16.mxu1 %v3188_v12 }
 0x269   : > { %2746 = vmatpush3.bf16.msra.mxu1 %v3188_v12 }
 0x26a   : > { %2747 = vmatprep.subr.bf16.mxu1 %v3189_v52 }
 0x26c   : > { %2068 = vmatmul.mubr.bf16.gmra.mrb[116].mxu1 %v3147_v9 }
 0x26d   : > { %2748 = vmatpush3.bf16.msra.mxu1 %v3189_v52  ;;  %2075 = vmatprep.mubr.bf16.mxu1 %v3148_v46 }
 0x26e   : > { %2749 = vmatprep.subr.bf16.mxu1 %v3190_v49 }
 0x271   : > { %2750 = vmatpush3.bf16.msra.mxu1 %v3190_v49 }
 0x272   : > { %2751 = vmatprep.subr.bf16.mxu1 %v3191_v15 }
 0x274   : > { %2076 = vmatmul.mubr.bf16.gmra.mrb[120].mxu1 %v3150_v3 }
 0x275   : > { %2752 = vmatpush3.bf16.msra.mxu1 %v3191_v15  ;;  %2755 = vmatprep.mubr.bf16.mxu1 %v3151_v1 }
 0x276   : > { %2753 = vmatprep.subr.bf16.mxu1 %v3192_v29 }
 0x279   : > { %2754 = vmatpush3.bf16.msra.mxu1 %v3192_v29 }
 0x27c   : > { %2756 = vmatmul.mubr.bf16.vlgmr.msra.gmra.mrb[124].mxu1 %v3152_v47 }
 0x27d   : > { %2759 = vmatprep.mubr.bf16.mxu1 %v3153_v51 }
 0x284   : > { %2760 = vmatmul.mubr.bf16.gmra.mrb[128].mxu1 %v3154_v40 }
 0x285   : > { %2763 = vmatprep.mubr.bf16.mxu1 %v3155_v38 }
 0x28c   : > { %2764 = vmatmul.mubr.bf16.gmra.mrb[132].mxu1 %v3156_v6 }
 0x28d   : > { %2767 = vmatprep.mubr.bf16.mxu1 %v3157_v63 }
 0x294   : > { %2768 = vmatmul.mubr.bf16.gmra.mrb[136].mxu1 %v3158_v32 }
 0x295   : > { %2779 = vmatprep.mubr.msk.bf16.mxu1 %vm2327_vm0, %v3159_v44 }
 0x32f   : > { %v2693_v57 = vpop.f32.mrb[108].mxu1 }
 0x330   : > { %v2694_v50 = vpop.f32.mrb[109].mxu1 }
 0x331   : > { %v2695_v10 = vadd.f32 %v2694_v50, %v2693_v57  ;;  %v2696_v18 = vpop.f32.mrb[110].mxu1 }
 0x332   : > { %v2697_v39 = vpop.f32.mrb[111].mxu1 }
 0x333   : > { %v2084_v20 = vmax.f32 %v2695_v10, 1e-10  ;;  %v2698_v26 = vadd.f32 %v2697_v39, %v2696_v18 }
 0x335   : > { %3161 = vlog2.f32 %v2084_v20  ;;  %v2085_v60 = vmax.f32 %v2698_v26, 1e-10 }
 0x337   : > { %3163 = vlog2.f32 %v2085_v60  ;;  %v2699_v56 = vpop.f32.mrb[112].mxu1 }
 0x338   : > { %v2700_v55 = vpop.f32.mrb[113].mxu1 }
 0x339   : > { %v2701_v23 = vadd.f32 %v2700_v55, %v2699_v56  ;;  %v2702_v25 = vpop.f32.mrb[114].mxu1 }
 0x33a   : > { %v2703_v4 = vpop.f32.mrb[115].mxu1 }
 0x33b   : > { %v2086_v43 = vmax.f32 %v2701_v23, 1e-10  ;;  %v2704_v22 = vadd.f32 %v2703_v4, %v2702_v25 }
 0x33d   : > { %3165 = vlog2.f32 %v2086_v43  ;;  %v2087_v31 = vmax.f32 %v2704_v22, 1e-10 }
 0x33f   : > { %v3162_v42 = vpop.eup %3161  ;;  %3167 = vlog2.f32 %v2087_v31  ;;  %v2705_v17 = vpop.f32.mrb[116].mxu1 }
 0x340   : > { %v2093_v2 = vmul.f32 0.6931472, %v3162_v42  ;;  %v2706_v0 = vpop.f32.mrb[117].mxu1 }
 0x341   : > { %v3164_v14 = vpop.eup %3163  ;;  %v2707_v30 = vadd.f32 %v2706_v0, %v2705_v17  ;;  %v2708_v33 = vpop.f32.mrb[118].mxu1 }
 0x342   : > { %v2108_v19 = vmul.f32 0.4342945, %v2093_v2  ;;  %v2095_v37 = vmul.f32 0.6931472, %v3164_v14  ;;  %v2709_v13 = vpop.f32.mrb[119].mxu1 }
 0x343   : > { %v2088_v36 = vmax.f32 %v2707_v30, 1e-10  ;;  %v2710_v61 = vadd.f32 %v2709_v13, %v2708_v33 }
 0x344   : > { %2116 = vst [vmem:[%s4093_s13] sm:$0xff] %v2108_v19  ;;  %v2109_v35 = vmul.f32 0.4342945, %v2095_v37 }
 0x345   : > { %3169 = vlog2.f32 %v2088_v36  ;;  %v2089_v8 = vmax.f32 %v2710_v61, 1e-10 }
 0x346   : > { %2117 = vst [vmem:[%s4093_s13 + $0x8] sm:$0xff] %v2109_v35 }
 0x347   : > { %v3166_v16 = vpop.eup %3165  ;;  %3171 = vlog2.f32 %v2089_v8  ;;  %v2711_v21 = vpop.f32.mrb[120].mxu1 }
 0x348   : > { %v2097_v59 = vmul.f32 0.6931472, %v3166_v16  ;;  %v2712_v45 = vpop.f32.mrb[121].mxu1 }
 0x349   : > { %v3168_v34 = vpop.eup %3167  ;;  %v2713_v24 = vadd.f32 %v2712_v45, %v2711_v21  ;;  %v2714_v58 = vpop.f32.mrb[122].mxu1 }
 0x34a   : > { %v2110_v48 = vmul.f32 0.4342945, %v2097_v59  ;;  %v2099_v11 = vmul.f32 0.6931472, %v3168_v34  ;;  %v2715_v62 = vpop.f32.mrb[123].mxu1 }
 0x34b   : > { %v2090_v28 = vmax.f32 %v2713_v24, 1e-10  ;;  %v2716_v54 = vadd.f32 %v2715_v62, %v2714_v58  ;;  %v3160_v58 = vld [vmem:[%s4124_s4 + $0x8] sm:$0xff]  }
 0x34c   : > { %2118 = vst [vmem:[%s4093_s13 + $0x10] sm:$0xff] %v2110_v48  ;;  %v2111_v27 = vmul.f32 0.4342945, %v2099_v11 }
 0x34d   : > { %3173 = vlog2.f32 %v2090_v28  ;;  %v2091_v7 = vmax.f32 %v2716_v54, 1e-10 }
 0x34e   : > { %2119 = vst [vmem:[%s4093_s13 + $0x18] sm:$0xff] %v2111_v27 }
 0x34f   : > { %v3170_v41 = vpop.eup %3169  ;;  %3175 = vlog2.f32 %v2091_v7  ;;  %v2757_v5 = vpop.f32.mrb[124].mxu1 }
 0x350   : > { %v2101_v53 = vmul.f32 0.6931472, %v3170_v41  ;;  %v2222_v12 = vpop.f32.mrb[125].mxu1  ;;  %v2287_v50 = vmul.f32 %v2757_v5, %v2757_v5 }
 0x351   : > { %v3172_v9 = vpop.eup %3171  ;;  %v2758_v46 = vpop.f32.mrb[126].mxu1  ;;  %v2285_v39 = vmul.f32 %v2222_v12, %v2222_v12 }
 0x352   : > { %v2112_v52 = vmul.f32 0.4342945, %v2101_v53  ;;  %v2103_v49 = vmul.f32 0.6931472, %v3172_v9  ;;  %v2225_v3 = vpop.f32.mrb[127].mxu1  ;;  %v2288_v60 = vmul.f32 %v2758_v46, %v2758_v46 }
 0x353   : > { %v2286_v25 = vmul.f32 %v2225_v3, %v2225_v3 }
 0x354   : > { %2120 = vst [vmem:[%s4093_s13 + $0x20] sm:$0xff] %v2112_v52  ;;  %v2113_v1 = vmul.f32 0.4342945, %v2103_v49 }
 0x356   : > { %2121 = vst [vmem:[%s4093_s13 + $0x28] sm:$0xff] %v2113_v1 }
 0x357   : > { %v3174_v15 = vpop.eup %3173  ;;  %v2761_v29 = vpop.f32.mrb[128].mxu1 }
 0x358   : > { %v2105_v47 = vmul.f32 0.6931472, %v3174_v15  ;;  %v2238_v51 = vpop.f32.mrb[129].mxu1  ;;  %v2291_v0 = vmul.f32 %v2761_v29, %v2761_v29 }
 0x359   : > { %v3176_v40 = vpop.eup %3175  ;;  %v2762_v38 = vpop.f32.mrb[130].mxu1  ;;  %v2289_v33 = vmul.f32 %v2238_v51, %v2238_v51 }
 0x35a   : > { %v2114_v6 = vmul.f32 0.4342945, %v2105_v47  ;;  %v2107_v63 = vmul.f32 0.6931472, %v3176_v40  ;;  %v2241_v32 = vpop.f32.mrb[131].mxu1  ;;  %v2292_v13 = vmul.f32 %v2762_v38, %v2762_v38 }
 0x35b   : > { %v2290_v8 = vmul.f32 %v2241_v32, %v2241_v32 }
 0x35c   : > { %2122 = vst [vmem:[%s4093_s13 + $0x30] sm:$0xff] %v2114_v6  ;;  %v2115_v44 = vmul.f32 0.4342945, %v2107_v63 }
 0x35e   : > { %2123 = vst [vmem:[%s4093_s13 + $0x38] sm:$0xff] %v2115_v44 }
 0x35f   : > { %v2765_v57 = vpop.f32.mrb[132].mxu1 }
 0x360   : > { %v2295_v10 = vmul.f32 %v2765_v57, %v2765_v57  ;;  %v2254_v18 = vpop.f32.mrb[133].mxu1 }
 0x361   : > { %v2293_v20 = vmul.f32 %v2254_v18, %v2254_v18  ;;  %v2766_v26 = vpop.f32.mrb[134].mxu1 }
 0x362   : > { %v2303_v56 = vadd.f32 %v2295_v10, %v2287_v50  ;;  %v2296_v55 = vmul.f32 %v2766_v26, %v2766_v26  ;;  %v2257_v23 = vpop.f32.mrb[135].mxu1 }
 0x363   : > { %v2301_v4 = vadd.f32 %v2293_v20, %v2285_v39  ;;  %v2294_v43 = vmul.f32 %v2257_v23, %v2257_v23 }
 0x364   : > { %v2304_v22 = vadd.f32 %v2296_v55, %v2288_v60 }
 0x365   : > { %v2302_v31 = vadd.f32 %v2294_v43, %v2286_v25 }
 0x366   : > { %v2314_v42 = vpack.c.bf16 %v2304_v22, %v2303_v56 }
 0x367   : > { %v2769_v17 = vpop.f32.mrb[136].mxu1  ;;  %v2313_v2 = vpack.c.bf16 %v2302_v31, %v2301_v4 }
 0x368   : > { %v2299_v14 = vmul.f32 %v2769_v17, %v2769_v17  ;;  %v2270_v30 = vpop.f32.mrb[137].mxu1 }
 0x369   : > { %v2297_v19 = vmul.f32 %v2270_v30, %v2270_v30  ;;  %v2770_v37 = vpop.f32.mrb[138].mxu1  ;;  %2771 = vmatprep.subr.bf16.mxu1 %v2313_v2 }
 0x36a   : > { %v2307_v36 = vadd.f32 %v2299_v14, %v2291_v0  ;;  %v2300_v61 = vmul.f32 %v2770_v37, %v2770_v37  ;;  %v2273_v35 = vpop.f32.mrb[139].mxu1  ;;  %2772 = vmatpush3.bf16.msra.mxu1 %v2313_v2 }
 0x36b   : > { %v2305_v16 = vadd.f32 %v2297_v19, %v2289_v33  ;;  %v2298_v21 = vmul.f32 %v2273_v35, %v2273_v35  ;;  %2773 = vmatprep.subr.bf16.mxu1 %v2314_v42 }
 0x36c   : > { %v2308_v59 = vadd.f32 %v2300_v61, %v2292_v13 }
 0x36d   : > { %v2306_v45 = vadd.f32 %v2298_v21, %v2290_v8 }
 0x36e   : > { %2774 = vmatpush3.bf16.msra.mxu1 %v2314_v42  ;;  %v2316_v34 = vpack.c.bf16 %v2308_v59, %v2307_v36 }
 0x36f   : > { %v2315_v24 = vpack.c.bf16 %v2306_v45, %v2305_v16 }
 0x371   : > { %2775 = vmatprep.subr.bf16.mxu1 %v2315_v24 }
 0x372   : > { %2776 = vmatpush3.bf16.msra.mxu1 %v2315_v24 }
 0x373   : > { %2777 = vmatprep.subr.bf16.mxu1 %v2316_v34 }
 0x376   : > { %2778 = vmatpush3.bf16.msra.mxu1 %v2316_v34 }
 0x379   : > { %2780 = vmatmul.mubr.msk.bf16.vlgmr.msra.gmra.mrb[140].mxu1 %vm2327_vm0, %v3160_v58 }
 0x44c   : > { %v2781_v48 = vpop.f32.mrb[140].mxu1 }
 0x44d   : > { %v2385_v11 = vmax.f32 %v2781_v48, 1e-10  ;;  %v2368_v62 = vpop.f32.mrb[141].mxu1 }
 0x44e   : > { %v2383_v28 = vmax.f32 %v2368_v62, 1e-10  ;;  %v2782_v54 = vpop.f32.mrb[142].mxu1 }
 0x44f   : > { %3177 = vlog2.f32 %v2385_v11  ;;  %v2386_v27 = vmax.f32 %v2782_v54, 1e-10  ;;  %v2371_v7 = vpop.f32.mrb[143].mxu1 }
 0x450   : > { %3179 = vlog2.f32 %v2383_v28  ;;  %v2384_v41 = vmax.f32 %v2371_v7, 1e-10 }
 0x451   : > { %3181 = vlog2.f32 %v2386_v27 }
 0x452   : > { %3183 = vlog2.f32 %v2384_v41 }
 0x459   : > { %v3178_v5 = vpop.eup %3177 }
 0x45a   : > { %v3180_v53 = vpop.eup %3179  ;;  %v2392_v12 = vmul.f32 0.6931472, %v3178_v5 }
 0x45b   : > { %v3182_v9 = vpop.eup %3181  ;;  %v2388_v46 = vmul.f32 0.6931472, %v3180_v53 }
 0x45c   : > { %v3184_v52 = vpop.eup %3183  ;;  %v2397_v49 = vmul.f32 0.4342945, %v2392_v12  ;;  %v2394_v3 = vmul.f32 0.6931472, %v3182_v9 }
 0x45d   : > { %v2395_v1 = vmul.f32 0.4342945, %v2388_v46  ;;  %v2390_v15 = vmul.f32 0.6931472, %v3184_v52 }
 0x45e   : > { %2401 = vst [vmem:[%s4093_s13 + $0x50] sm:$0xff] %v2397_v49  ;;  %v2398_v29 = vmul.f32 0.4342945, %v2394_v3 }
 0x45f   : > { %2399 = vst [vmem:[%s4093_s13 + $0x40] sm:$0xff] %v2395_v1  ;;  %v2396_v47 = vmul.f32 0.4342945, %v2390_v15 }
 0x460   : > { %2402 = vst [vmem:[%s4093_s13 + $0x58] sm:$0xff] %v2398_v29 }
 0x461   : > { %2400 = vst [vmem:[%s4093_s13 + $0x48] sm:$0xff] %v2396_v47 }
 0x462 PF: > { %s15_s20 = sadd.s32 1, %s3215_s20   ;;  %s4126_s18 = smov %s3211_s19 }
 0x463   : > { %p12_p5 = scmp.ge.s32.totalorder %s15_s20, 4   ;;  %s4127_s19 = smov %s4129_s21 }
 0x465   :  { %14 = sbr.rel (!%p12_p5) target bundleno = 2 (0x2), region = 70 }

</bundles_post_ra>
